<compile_context>
chip_gen: v5e
topology: v5e:2x2
jax: 0.10.0
libtpu: 0.0.40
codegen_flags: <defaults>
</compile_context>

<pallas_src>
import functools

import jax
import jax.numpy as jnp
import numpy as np
from jax import lax
from jax.experimental import pallas as pl
from jax.experimental.pallas import tpu as pltpu


def _lstm_kernel(x_ref, w_hid_ref, b_hid_ref, w_ih0_ref, b0_ref, w_comb_ref,
                 w_hh_ref, b_rest_ref, w_ih_rest_ref, w_out_ref, b_out_ref,
                 out_ref, *, n_layers, hidden_size, seq_len, batch, pre_len):
    T, B, H, L = seq_len, batch, hidden_size, n_layers
    G = 4 * H
    f32 = jnp.float32

    # ---- hoisted, well-shaped MXU work (off the serial recurrence chain) ----
    # input projection for ALL timesteps: (T*B, F) @ (F, H) + b_hid
    xc = jnp.dot(x_ref[...], w_hid_ref[...], preferred_element_type=f32) + b_hid_ref[...]
    # layer-0 input-gate contribution for ALL timesteps, bias folded in: (T*B, 4H)
    gx0 = jnp.dot(xc, w_ih0_ref[...], preferred_element_type=f32) + b0_ref[...]
    # TODO(synk): once T*B*H scales up (VMEM: 32 MiB scoped default, 64 MiB physical on
    # v7x), switch to a time-tiled grid ("arbitrary" axis) with pipelined BlockSpecs for
    # x / gx0 and set pltpu.CompilerParams(vmem_limit_bytes=...).

    # ---- load weights / pre-broadcast biases once (outside the unrolled loop) ----
    w_comb = w_comb_ref[...]                                 # (H,4H) if L==1 else (H,8H)
    w_hh = [w_hh_ref[l - 1] for l in range(1, L)]            # each (H, 4H)
    b_rest = [jnp.broadcast_to(b_rest_ref[l - 1], (B, G)) for l in range(1, L)]
    w_ihr = [w_ih_rest_ref[l - 2] for l in range(2, L)]      # each (H, 4H)
    w_out = w_out_ref[...]                                   # (H, O)
    b_out = b_out_ref[...]                                   # (1, O)

    # gate columns are host-reordered to (i, f, o | g): sigmoid on 3H, tanh on H only
    def cell(gates, c_prev):
        sig = jax.nn.sigmoid(gates[:, :3 * H])               # (B, 3H)  EUP
        g_g = jnp.tanh(gates[:, 3 * H:])                     # (B, H)   EUP
        i_g = sig[:, :H]
        f_g = sig[:, H:2 * H]
        o_g = sig[:, 2 * H:]
        c_new = f_g * c_prev + i_g * g_g
        h_new = o_g * jnp.tanh(c_new)
        return h_new, c_new

    # ---- LSTM states kept as values (registers), not VMEM scratch ----
    h = [jnp.zeros((B, H), f32) for _ in range(L)]
    c = [jnp.zeros((B, H), f32) for _ in range(L)]
    # Partial-gate precomputations, issued one wave before consumption (right after the
    # producing h is updated) so they overlap the layer-0 critical chain:
    #   hh_pre[l] (l>=1) = h[l] @ Whh_l + b_l   (starts at b_l since h[l]_{-1} = 0)
    #   ih_pre[l] (l>=2) = h[l-1] @ Wih_l
    hh_pre = [None] + [b_rest[l - 1] for l in range(1, L)]
    ih_pre = [None] * L

    n_steps = T - 1                    # timestep T-1 never feeds the output head: skip
    t_first_keep = n_steps - pre_len
    keep = []

    # ---- layer-wavefront recurrence, statically unrolled.  At wave s, layer l computes
    #      timestep s-l; all layers active within a wave are data-independent. ----
    # TODO(synk): for T beyond ~32 replace the full unroll with
    # lax.fori_loop(..., unroll=4..8) carrying (h, c, hh_pre) to bound vreg live ranges.
    num_waves = n_steps + (L - 1)
    for s in range(num_waves):
        l_lo = max(0, s - (n_steps - 1))
        l_hi = min(L - 1, s)
        # One MXU push per wave drives both layer 0 (hh, time s) and layer 1 (ih, time
        # s-1) from the same LHS h[0]:  comb = h0 @ [Whh0 | Wih1]  -> (B, 8H)
        comb = None
        if s > 0 and (l_lo == 0 or (L > 1 and l_lo == 1)):
            comb = jnp.dot(h[0], w_comb, preferred_element_type=f32)
        # Process active layers top-down so every consumer reads previous-wave values.
        for l in range(l_hi, l_lo - 1, -1):
            t = s - l
            if l == 0:
                g = gx0[t * B:(t + 1) * B]       # static, 8-row-aligned slice
                if comb is not None:
                    g = g + comb[:, :G]
            elif l == 1:
                g = comb[:, G:] + hh_pre[1]
            else:
                g = ih_pre[l] + hh_pre[l]
            h[l], c[l] = cell(g, c[l])
            # precompute next-wave partial gates (off the critical chain)
            if l >= 1 and t < n_steps - 1:
                hh_pre[l] = jnp.dot(h[l], w_hh[l - 1],
                                    preferred_element_type=f32) + b_rest[l - 1]
            if 1 <= l <= L - 2:
                ih_pre[l + 1] = jnp.dot(h[l], w_ihr[l - 1], preferred_element_type=f32)
            if l == L - 1 and t >= t_first_keep:
                keep.append(h[l])

    # ---- output head only on the last pre_len timesteps ----
    Hmat = jnp.maximum(jnp.concatenate(keep, axis=0), 0.0)    # (pre_len*B, H)
    # TODO(synk): at O=2 a VPU broadcast-multiply + lane reduce would drop the last MXU
    # pop from the tail; negligible at these shapes.
    out_ref[...] = jnp.dot(Hmat, w_out, preferred_element_type=f32) + b_out


class LSTMPallas:
    """Mirrors the PyTorch LSTM module (hidden Linear -> nn.LSTM -> ReLU -> Linear)."""

    def __init__(self, input_size, output_size, pre_len, hidden_size, n_layers, key):
        self.input_size = input_size
        self.output_size = output_size
        self.pre_len = pre_len
        self.hidden_size = hidden_size
        self.n_layers = n_layers

        H, F, O, L = hidden_size, input_size, output_size, n_layers
        ks = jax.random.split(key, 4 + 4 * L)

        def unif(k, shape, bound):
            return jax.random.uniform(k, shape, jnp.float32, -bound, bound)

        # hidden Linear: (H, F) weight, (H,) bias   (PyTorch convention)
        bF = 1.0 / np.sqrt(F)
        self.w_hid = unif(ks[0], (H, F), bF)
        self.b_hid = unif(ks[1], (H,), bF)
        # output Linear: (O, H), (O,)
        bH = 1.0 / np.sqrt(H)
        self.w_out = unif(ks[2], (O, H), bH)
        self.b_out = unif(ks[3], (O,), bH)
        # LSTM per layer: weight_ih (4H, H), weight_hh (4H, H), bias_ih (4H,), bias_hh (4H,)
        self.w_ih, self.w_hh, self.b_ih, self.b_hh = [], [], [], []
        for l in range(L):
            self.w_ih.append(unif(ks[4 + 4 * l + 0], (4 * H, H), bH))
            self.w_hh.append(unif(ks[4 + 4 * l + 1], (4 * H, H), bH))
            self.b_ih.append(unif(ks[4 + 4 * l + 2], (4 * H,), bH))
            self.b_hh.append(unif(ks[4 + 4 * l + 3], (4 * H,), bH))

        # ---- kernel-ready parameters (pre-transposed, gate-reordered, packed) ----
        # PyTorch gate order (i, f, g, o) -> kernel order (i, f, o, g):
        # sigmoid over the first 3H columns, tanh over the last H.
        perm = np.concatenate([np.arange(0, H), np.arange(H, 2 * H),
                               np.arange(3 * H, 4 * H), np.arange(2 * H, 3 * H)])
        self._w_hid_t = self.w_hid.T                                     # (F, H)
        self._b_hid2 = self.b_hid[None, :]                               # (1, H)
        self._w_out_t = self.w_out.T                                     # (H, O)
        self._b_out2 = self.b_out[None, :]                               # (1, O)
        # layer 0 (ih matmul hoisted over all timesteps in the kernel)
        self._w_ih0_t = self.w_ih[0].T[:, perm]                          # (H, 4H)
        self._b0 = (self.b_ih[0] + self.b_hh[0])[perm][None, :]          # (1, 4H)
        w_hh0_t = self.w_hh[0].T[:, perm]                                # (H, 4H)
        if L > 1:
            # one MXU push per wave: [Whh0^T | Wih1^T]  -> (H, 8H)
            self._w_comb = jnp.concatenate([w_hh0_t, self.w_ih[1].T[:, perm]], axis=1)
            self._w_hh_rest = jnp.stack(
                [self.w_hh[l].T[:, perm] for l in range(1, L)])          # (L-1, H, 4H)
            self._b_rest = jnp.stack(
                [((self.b_ih[l] + self.b_hh[l])[perm])[None, :] for l in range(1, L)])
        else:
            self._w_comb = w_hh0_t                                       # (H, 4H)
            self._w_hh_rest = jnp.zeros((1, H, 4 * H), jnp.float32)      # unused dummy
            self._b_rest = jnp.zeros((1, 1, 4 * H), jnp.float32)         # unused dummy
        if L > 2:
            self._w_ih_rest = jnp.stack(
                [self.w_ih[l].T[:, perm] for l in range(2, L)])          # (L-2, H, 4H)
        else:
            self._w_ih_rest = jnp.zeros((1, H, 4 * H), jnp.float32)      # unused dummy

    def __call__(self, x):
        # x: (B, T, F) float32, matching the PyTorch batch_first input.
        B, T, F = x.shape
        H, O, L = self.hidden_size, self.output_size, self.n_layers
        assert 1 <= self.pre_len <= T - 1, "pre_len must satisfy 1 <= pre_len <= T-1"

        # Free layout plumbing in the wrapper: time-major, batch zero-padded to a full
        # sublane group (8) so every per-step tile in the kernel is (8,128)-aligned,
        # then flattened to (T*Bp, F) so the kernel never reshapes its inputs.
        Bp = max(8, ((B + 7) // 8) * 8)
        x_tb = jnp.transpose(x, (1, 0, 2)).astype(jnp.float32)          # (T, B, F)
        if Bp != B:
            x_tb = jnp.pad(x_tb, ((0, 0), (0, Bp - B), (0, 0)))
        x_flat = x_tb.reshape(T * Bp, F)

        kernel = functools.partial(
            _lstm_kernel, n_layers=L, hidden_size=H,
            seq_len=T, batch=Bp, pre_len=self.pre_len)
        vmem = pl.BlockSpec(memory_space=pltpu.MemorySpace.VMEM)
        # TODO(synk): for large B add a batch-tile grid with
        # dimension_semantics=("parallel",) so both v7x TensorCores are used; at Bp=8 a
        # single program is optimal on every generation.
        out_flat = pl.pallas_call(
            kernel,
            out_shape=jax.ShapeDtypeStruct((self.pre_len * Bp, O), jnp.float32),
            in_specs=[vmem] * 11,
            out_specs=vmem,
        )(x_flat, self._w_hid_t, self._b_hid2, self._w_ih0_t, self._b0,
          self._w_comb, self._w_hh_rest, self._b_rest, self._w_ih_rest,
          self._w_out_t, self._b_out2)

        # (pre_len*Bp, O) -> (B, pre_len, O), dropping the padded batch rows.
        out = out_flat.reshape(self.pre_len, Bp, O)[:, :B, :]
        return out.transpose(1, 0, 2)

    # Pure-JAX reference (same math as the PyTorch forward) for verification.
    def reference(self, x):
        B, T, F = x.shape
        H, L = self.hidden_size, self.n_layers
        xc = jnp.einsum('btf,hf->bth', x, self.w_hid,
                        precision=lax.Precision.HIGHEST) + self.b_hid
        h = [jnp.zeros((B, H), jnp.float32) for _ in range(L)]
        c = [jnp.zeros((B, H), jnp.float32) for _ in range(L)]
        Hs = []
        for t in range(T):
            inp = xc[:, t, :]
            for l in range(L):
                gates = (inp @ self.w_ih[l].T + self.b_ih[l]
                         + h[l] @ self.w_hh[l].T + self.b_hh[l])
                i_g = jax.nn.sigmoid(gates[:, 0 * H:1 * H])
                f_g = jax.nn.sigmoid(gates[:, 1 * H:2 * H])
                g_g = jnp.tanh(gates[:, 2 * H:3 * H])
                o_g = jax.nn.sigmoid(gates[:, 3 * H:4 * H])
                c[l] = f_g * c[l] + i_g * g_g
                h[l] = o_g * jnp.tanh(c[l])
                inp = h[l]
            if t != T - 1:
                Hs.append(h[-1])
        Hmat = jnp.maximum(jnp.stack(Hs, axis=1), 0.0)                 # (B, T-1, H)
        out = jnp.einsum('bth,oh->bto', Hmat, self.w_out,
                         precision=lax.Precision.HIGHEST) + self.b_out
        return out[:, -self.pre_len:, :]


if __name__ == "__main__":
    batch, obs_len, input_size = 2, 8, 4
    hidden_size, n_layers = 32, 2
    output_size, pre_len = 2, 3

    key = jax.random.PRNGKey(0)
    k_param, k_x = jax.random.split(key)
    model = LSTMPallas(input_size, output_size, pre_len, hidden_size, n_layers, k_param)

    x = jax.random.normal(k_x, (batch, obs_len, input_size), dtype=jnp.float32)

    y = model(x)
    y = jax.block_until_ready(y)

    y_ref = model.reference(x)
    np.testing.assert_allclose(np.asarray(y), np.asarray(y_ref), rtol=1e-3, atol=1e-3)
    assert y.shape == (batch, pre_len, output_size)

    print("KERNEL_OK")
</pallas_src>

<mosaic_0001>
module attributes {stable_mosaic.version = 11 : i64} {
  func.func @_lstm_kernel(%arg0: memref<64x4xf32, #tpu.memory_space<vmem>>, %arg1: memref<4x32xf32, #tpu.memory_space<vmem>>, %arg2: memref<1x32xf32, #tpu.memory_space<vmem>>, %arg3: memref<32x128xf32, #tpu.memory_space<vmem>>, %arg4: memref<1x128xf32, #tpu.memory_space<vmem>>, %arg5: memref<32x256xf32, #tpu.memory_space<vmem>>, %arg6: memref<1x32x128xf32, #tpu.memory_space<vmem>>, %arg7: memref<1x1x128xf32, #tpu.memory_space<vmem>>, %arg8: memref<1x32x128xf32, #tpu.memory_space<vmem>>, %arg9: memref<32x2xf32, #tpu.memory_space<vmem>>, %arg10: memref<1x2xf32, #tpu.memory_space<vmem>>, %arg11: memref<24x2xf32, #tpu.memory_space<vmem>>) attributes {dimension_semantics = [], scalar_prefetch = 0 : i64, scratch_operands = 0 : i64, tpu.core_type = #tpu.core_type<tc>} {
    %c0 = arith.constant 0 : index
    %c0_0 = arith.constant 0 : index
    %0 = vector.load %arg0[%c0, %c0_0] : memref<64x4xf32, #tpu.memory_space<vmem>>, vector<64x4xf32>
    %c0_1 = arith.constant 0 : index
    %c0_2 = arith.constant 0 : index
    %1 = vector.load %arg1[%c0_1, %c0_2] : memref<4x32xf32, #tpu.memory_space<vmem>>, vector<4x32xf32>
    %cst = arith.constant dense<0.000000e+00> : vector<64x32xf32>
    %2 = tpu.matmul %0, %1, %cst {dimension_numbers = #tpu.dot_dimension_numbers<[1], [0], [0], [1], [0, 0, 1, 1], [], []>} : vector<64x4xf32>, vector<4x32xf32>, vector<64x32xf32> -> vector<64x32xf32>
    %c0_3 = arith.constant 0 : index
    %c0_4 = arith.constant 0 : index
    %3 = vector.load %arg2[%c0_3, %c0_4] : memref<1x32xf32, #tpu.memory_space<vmem>>, vector<1x32xf32>
    %4 = vector.broadcast %3 : vector<1x32xf32> to vector<64x32xf32>
    %5 = arith.addf %2, %4 : vector<64x32xf32>
    %c0_5 = arith.constant 0 : index
    %c0_6 = arith.constant 0 : index
    %6 = vector.load %arg3[%c0_5, %c0_6] : memref<32x128xf32, #tpu.memory_space<vmem>>, vector<32x128xf32>
    %cst_7 = arith.constant dense<0.000000e+00> : vector<64x128xf32>
    %7 = tpu.matmul %5, %6, %cst_7 {dimension_numbers = #tpu.dot_dimension_numbers<[1], [0], [0], [1], [0, 0, 1, 1], [], []>} : vector<64x32xf32>, vector<32x128xf32>, vector<64x128xf32> -> vector<64x128xf32>
    %c0_8 = arith.constant 0 : index
    %c0_9 = arith.constant 0 : index
    %8 = vector.load %arg4[%c0_8, %c0_9] : memref<1x128xf32, #tpu.memory_space<vmem>>, vector<1x128xf32>
    %9 = vector.broadcast %8 : vector<1x128xf32> to vector<64x128xf32>
    %10 = arith.addf %7, %9 : vector<64x128xf32>
    %c0_10 = arith.constant 0 : index
    %c0_11 = arith.constant 0 : index
    %11 = vector.load %arg5[%c0_10, %c0_11] : memref<32x256xf32, #tpu.memory_space<vmem>>, vector<32x256xf32>
    %c0_12 = arith.constant 0 : index
    %c0_13 = arith.constant 0 : index
    %c0_14 = arith.constant 0 : index
    %12 = vector.load %arg6[%c0_12, %c0_13, %c0_14] : memref<1x32x128xf32, #tpu.memory_space<vmem>>, vector<1x32x128xf32>
    %13 = vector.shape_cast %12 : vector<1x32x128xf32> to vector<32x128xf32>
    %c0_15 = arith.constant 0 : index
    %c0_16 = arith.constant 0 : index
    %c0_17 = arith.constant 0 : index
    %14 = vector.load %arg7[%c0_15, %c0_16, %c0_17] : memref<1x1x128xf32, #tpu.memory_space<vmem>>, vector<1x1x128xf32>
    %15 = vector.shape_cast %14 : vector<1x1x128xf32> to vector<1x128xf32>
    %16 = vector.shape_cast %15 : vector<1x128xf32> to vector<1x128xf32>
    %17 = vector.broadcast %16 : vector<1x128xf32> to vector<8x128xf32>
    %c0_18 = arith.constant 0 : index
    %c0_19 = arith.constant 0 : index
    %18 = vector.load %arg9[%c0_18, %c0_19] : memref<32x2xf32, #tpu.memory_space<vmem>>, vector<32x2xf32>
    %c0_20 = arith.constant 0 : index
    %c0_21 = arith.constant 0 : index
    %19 = vector.load %arg10[%c0_20, %c0_21] : memref<1x2xf32, #tpu.memory_space<vmem>>, vector<1x2xf32>
    %cst_22 = arith.constant 0.000000e+00 : f32
    %20 = vector.broadcast %cst_22 : f32 to vector<8x32xf32>
    %cst_23 = arith.constant 0.000000e+00 : f32
    %21 = vector.broadcast %cst_23 : f32 to vector<8x32xf32>
    %22 = vector.extract_strided_slice %10 {offsets = [0, 0], sizes = [8, 128], strides = [1, 1]} : vector<64x128xf32> to vector<8x128xf32>
    %23 = vector.extract_strided_slice %22 {offsets = [0, 0], sizes = [8, 96], strides = [1, 1]} : vector<8x128xf32> to vector<8x96xf32>
    %24 = arith.negf %23 : vector<8x96xf32>
    %25 = math.exp %24 : vector<8x96xf32>
    %cst_24 = arith.constant 1.000000e+00 : f32
    %26 = vector.broadcast %cst_24 : f32 to vector<8x96xf32>
    %27 = arith.addf %26, %25 : vector<8x96xf32>
    %28 = arith.divf %26, %27 : vector<8x96xf32>
    %29 = vector.extract_strided_slice %22 {offsets = [0, 96], sizes = [8, 32], strides = [1, 1]} : vector<8x128xf32> to vector<8x32xf32>
    %30 = math.tanh %29 : vector<8x32xf32>
    %31 = vector.extract_strided_slice %28 {offsets = [0, 0], sizes = [8, 32], strides = [1, 1]} : vector<8x96xf32> to vector<8x32xf32>
    %32 = vector.extract_strided_slice %28 {offsets = [0, 32], sizes = [8, 32], strides = [1, 1]} : vector<8x96xf32> to vector<8x32xf32>
    %33 = vector.extract_strided_slice %28 {offsets = [0, 64], sizes = [8, 32], strides = [1, 1]} : vector<8x96xf32> to vector<8x32xf32>
    %34 = arith.mulf %32, %20 : vector<8x32xf32>
    %35 = arith.mulf %31, %30 : vector<8x32xf32>
    %36 = arith.addf %34, %35 : vector<8x32xf32>
    %37 = math.tanh %36 : vector<8x32xf32>
    %38 = arith.mulf %33, %37 : vector<8x32xf32>
    %cst_25 = arith.constant dense<0.000000e+00> : vector<8x256xf32>
    %39 = tpu.matmul %38, %11, %cst_25 {dimension_numbers = #tpu.dot_dimension_numbers<[1], [0], [0], [1], [0, 0, 1, 1], [], []>} : vector<8x32xf32>, vector<32x256xf32>, vector<8x256xf32> -> vector<8x256xf32>
    %40 = vector.extract_strided_slice %39 {offsets = [0, 128], sizes = [8, 128], strides = [1, 1]} : vector<8x256xf32> to vector<8x128xf32>
    %41 = arith.addf %40, %17 : vector<8x128xf32>
    %42 = vector.extract_strided_slice %41 {offsets = [0, 0], sizes = [8, 96], strides = [1, 1]} : vector<8x128xf32> to vector<8x96xf32>
    %43 = arith.negf %42 : vector<8x96xf32>
    %44 = math.exp %43 : vector<8x96xf32>
    %cst_26 = arith.constant 1.000000e+00 : f32
    %45 = vector.broadcast %cst_26 : f32 to vector<8x96xf32>
    %46 = arith.addf %45, %44 : vector<8x96xf32>
    %47 = arith.divf %45, %46 : vector<8x96xf32>
    %48 = vector.extract_strided_slice %41 {offsets = [0, 96], sizes = [8, 32], strides = [1, 1]} : vector<8x128xf32> to vector<8x32xf32>
    %49 = math.tanh %48 : vector<8x32xf32>
    %50 = vector.extract_strided_slice %47 {offsets = [0, 0], sizes = [8, 32], strides = [1, 1]} : vector<8x96xf32> to vector<8x32xf32>
    %51 = vector.extract_strided_slice %47 {offsets = [0, 32], sizes = [8, 32], strides = [1, 1]} : vector<8x96xf32> to vector<8x32xf32>
    %52 = vector.extract_strided_slice %47 {offsets = [0, 64], sizes = [8, 32], strides = [1, 1]} : vector<8x96xf32> to vector<8x32xf32>
    %53 = arith.mulf %51, %21 : vector<8x32xf32>
    %54 = arith.mulf %50, %49 : vector<8x32xf32>
    %55 = arith.addf %53, %54 : vector<8x32xf32>
    %56 = math.tanh %55 : vector<8x32xf32>
    %57 = arith.mulf %52, %56 : vector<8x32xf32>
    %cst_27 = arith.constant dense<0.000000e+00> : vector<8x128xf32>
    %58 = tpu.matmul %57, %13, %cst_27 {dimension_numbers = #tpu.dot_dimension_numbers<[1], [0], [0], [1], [0, 0, 1, 1], [], []>} : vector<8x32xf32>, vector<32x128xf32>, vector<8x128xf32> -> vector<8x128xf32>
    %59 = arith.addf %58, %17 : vector<8x128xf32>
    %60 = vector.extract_strided_slice %10 {offsets = [8, 0], sizes = [8, 128], strides = [1, 1]} : vector<64x128xf32> to vector<8x128xf32>
    %61 = vector.extract_strided_slice %39 {offsets = [0, 0], sizes = [8, 128], strides = [1, 1]} : vector<8x256xf32> to vector<8x128xf32>
    %62 = arith.addf %60, %61 : vector<8x128xf32>
    %63 = vector.extract_strided_slice %62 {offsets = [0, 0], sizes = [8, 96], strides = [1, 1]} : vector<8x128xf32> to vector<8x96xf32>
    %64 = arith.negf %63 : vector<8x96xf32>
    %65 = math.exp %64 : vector<8x96xf32>
    %cst_28 = arith.constant 1.000000e+00 : f32
    %66 = vector.broadcast %cst_28 : f32 to vector<8x96xf32>
    %67 = arith.addf %66, %65 : vector<8x96xf32>
    %68 = arith.divf %66, %67 : vector<8x96xf32>
    %69 = vector.extract_strided_slice %62 {offsets = [0, 96], sizes = [8, 32], strides = [1, 1]} : vector<8x128xf32> to vector<8x32xf32>
    %70 = math.tanh %69 : vector<8x32xf32>
    %71 = vector.extract_strided_slice %68 {offsets = [0, 0], sizes = [8, 32], strides = [1, 1]} : vector<8x96xf32> to vector<8x32xf32>
    %72 = vector.extract_strided_slice %68 {offsets = [0, 32], sizes = [8, 32], strides = [1, 1]} : vector<8x96xf32> to vector<8x32xf32>
    %73 = vector.extract_strided_slice %68 {offsets = [0, 64], sizes = [8, 32], strides = [1, 1]} : vector<8x96xf32> to vector<8x32xf32>
    %74 = arith.mulf %72, %36 : vector<8x32xf32>
    %75 = arith.mulf %71, %70 : vector<8x32xf32>
    %76 = arith.addf %74, %75 : vector<8x32xf32>
    %77 = math.tanh %76 : vector<8x32xf32>
    %78 = arith.mulf %73, %77 : vector<8x32xf32>
    %cst_29 = arith.constant dense<0.000000e+00> : vector<8x256xf32>
    %79 = tpu.matmul %78, %11, %cst_29 {dimension_numbers = #tpu.dot_dimension_numbers<[1], [0], [0], [1], [0, 0, 1, 1], [], []>} : vector<8x32xf32>, vector<32x256xf32>, vector<8x256xf32> -> vector<8x256xf32>
    %80 = vector.extract_strided_slice %79 {offsets = [0, 128], sizes = [8, 128], strides = [1, 1]} : vector<8x256xf32> to vector<8x128xf32>
    %81 = arith.addf %80, %59 : vector<8x128xf32>
    %82 = vector.extract_strided_slice %81 {offsets = [0, 0], sizes = [8, 96], strides = [1, 1]} : vector<8x128xf32> to vector<8x96xf32>
    %83 = arith.negf %82 : vector<8x96xf32>
    %84 = math.exp %83 : vector<8x96xf32>
    %cst_30 = arith.constant 1.000000e+00 : f32
    %85 = vector.broadcast %cst_30 : f32 to vector<8x96xf32>
    %86 = arith.addf %85, %84 : vector<8x96xf32>
    %87 = arith.divf %85, %86 : vector<8x96xf32>
    %88 = vector.extract_strided_slice %81 {offsets = [0, 96], sizes = [8, 32], strides = [1, 1]} : vector<8x128xf32> to vector<8x32xf32>
    %89 = math.tanh %88 : vector<8x32xf32>
    %90 = vector.extract_strided_slice %87 {offsets = [0, 0], sizes = [8, 32], strides = [1, 1]} : vector<8x96xf32> to vector<8x32xf32>
    %91 = vector.extract_strided_slice %87 {offsets = [0, 32], sizes = [8, 32], strides = [1, 1]} : vector<8x96xf32> to vector<8x32xf32>
    %92 = vector.extract_strided_slice %87 {offsets = [0, 64], sizes = [8, 32], strides = [1, 1]} : vector<8x96xf32> to vector<8x32xf32>
    %93 = arith.mulf %91, %55 : vector<8x32xf32>
    %94 = arith.mulf %90, %89 : vector<8x32xf32>
    %95 = arith.addf %93, %94 : vector<8x32xf32>
    %96 = math.tanh %95 : vector<8x32xf32>
    %97 = arith.mulf %92, %96 : vector<8x32xf32>
    %cst_31 = arith.constant dense<0.000000e+00> : vector<8x128xf32>
    %98 = tpu.matmul %97, %13, %cst_31 {dimension_numbers = #tpu.dot_dimension_numbers<[1], [0], [0], [1], [0, 0, 1, 1], [], []>} : vector<8x32xf32>, vector<32x128xf32>, vector<8x128xf32> -> vector<8x128xf32>
    %99 = arith.addf %98, %17 : vector<8x128xf32>
    %100 = vector.extract_strided_slice %10 {offsets = [16, 0], sizes = [8, 128], strides = [1, 1]} : vector<64x128xf32> to vector<8x128xf32>
    %101 = vector.extract_strided_slice %79 {offsets = [0, 0], sizes = [8, 128], strides = [1, 1]} : vector<8x256xf32> to vector<8x128xf32>
    %102 = arith.addf %100, %101 : vector<8x128xf32>
    %103 = vector.extract_strided_slice %102 {offsets = [0, 0], sizes = [8, 96], strides = [1, 1]} : vector<8x128xf32> to vector<8x96xf32>
    %104 = arith.negf %103 : vector<8x96xf32>
    %105 = math.exp %104 : vector<8x96xf32>
    %cst_32 = arith.constant 1.000000e+00 : f32
    %106 = vector.broadcast %cst_32 : f32 to vector<8x96xf32>
    %107 = arith.addf %106, %105 : vector<8x96xf32>
    %108 = arith.divf %106, %107 : vector<8x96xf32>
    %109 = vector.extract_strided_slice %102 {offsets = [0, 96], sizes = [8, 32], strides = [1, 1]} : vector<8x128xf32> to vector<8x32xf32>
    %110 = math.tanh %109 : vector<8x32xf32>
    %111 = vector.extract_strided_slice %108 {offsets = [0, 0], sizes = [8, 32], strides = [1, 1]} : vector<8x96xf32> to vector<8x32xf32>
    %112 = vector.extract_strided_slice %108 {offsets = [0, 32], sizes = [8, 32], strides = [1, 1]} : vector<8x96xf32> to vector<8x32xf32>
    %113 = vector.extract_strided_slice %108 {offsets = [0, 64], sizes = [8, 32], strides = [1, 1]} : vector<8x96xf32> to vector<8x32xf32>
    %114 = arith.mulf %112, %76 : vector<8x32xf32>
    %115 = arith.mulf %111, %110 : vector<8x32xf32>
    %116 = arith.addf %114, %115 : vector<8x32xf32>
    %117 = math.tanh %116 : vector<8x32xf32>
    %118 = arith.mulf %113, %117 : vector<8x32xf32>
    %cst_33 = arith.constant dense<0.000000e+00> : vector<8x256xf32>
    %119 = tpu.matmul %118, %11, %cst_33 {dimension_numbers = #tpu.dot_dimension_numbers<[1], [0], [0], [1], [0, 0, 1, 1], [], []>} : vector<8x32xf32>, vector<32x256xf32>, vector<8x256xf32> -> vector<8x256xf32>
    %120 = vector.extract_strided_slice %119 {offsets = [0, 128], sizes = [8, 128], strides = [1, 1]} : vector<8x256xf32> to vector<8x128xf32>
    %121 = arith.addf %120, %99 : vector<8x128xf32>
    %122 = vector.extract_strided_slice %121 {offsets = [0, 0], sizes = [8, 96], strides = [1, 1]} : vector<8x128xf32> to vector<8x96xf32>
    %123 = arith.negf %122 : vector<8x96xf32>
    %124 = math.exp %123 : vector<8x96xf32>
    %cst_34 = arith.constant 1.000000e+00 : f32
    %125 = vector.broadcast %cst_34 : f32 to vector<8x96xf32>
    %126 = arith.addf %125, %124 : vector<8x96xf32>
    %127 = arith.divf %125, %126 : vector<8x96xf32>
    %128 = vector.extract_strided_slice %121 {offsets = [0, 96], sizes = [8, 32], strides = [1, 1]} : vector<8x128xf32> to vector<8x32xf32>
    %129 = math.tanh %128 : vector<8x32xf32>
    %130 = vector.extract_strided_slice %127 {offsets = [0, 0], sizes = [8, 32], strides = [1, 1]} : vector<8x96xf32> to vector<8x32xf32>
    %131 = vector.extract_strided_slice %127 {offsets = [0, 32], sizes = [8, 32], strides = [1, 1]} : vector<8x96xf32> to vector<8x32xf32>
    %132 = vector.extract_strided_slice %127 {offsets = [0, 64], sizes = [8, 32], strides = [1, 1]} : vector<8x96xf32> to vector<8x32xf32>
    %133 = arith.mulf %131, %95 : vector<8x32xf32>
    %134 = arith.mulf %130, %129 : vector<8x32xf32>
    %135 = arith.addf %133, %134 : vector<8x32xf32>
    %136 = math.tanh %135 : vector<8x32xf32>
    %137 = arith.mulf %132, %136 : vector<8x32xf32>
    %cst_35 = arith.constant dense<0.000000e+00> : vector<8x128xf32>
    %138 = tpu.matmul %137, %13, %cst_35 {dimension_numbers = #tpu.dot_dimension_numbers<[1], [0], [0], [1], [0, 0, 1, 1], [], []>} : vector<8x32xf32>, vector<32x128xf32>, vector<8x128xf32> -> vector<8x128xf32>
    %139 = arith.addf %138, %17 : vector<8x128xf32>
    %140 = vector.extract_strided_slice %10 {offsets = [24, 0], sizes = [8, 128], strides = [1, 1]} : vector<64x128xf32> to vector<8x128xf32>
    %141 = vector.extract_strided_slice %119 {offsets = [0, 0], sizes = [8, 128], strides = [1, 1]} : vector<8x256xf32> to vector<8x128xf32>
    %142 = arith.addf %140, %141 : vector<8x128xf32>
    %143 = vector.extract_strided_slice %142 {offsets = [0, 0], sizes = [8, 96], strides = [1, 1]} : vector<8x128xf32> to vector<8x96xf32>
    %144 = arith.negf %143 : vector<8x96xf32>
    %145 = math.exp %144 : vector<8x96xf32>
    %cst_36 = arith.constant 1.000000e+00 : f32
    %146 = vector.broadcast %cst_36 : f32 to vector<8x96xf32>
    %147 = arith.addf %146, %145 : vector<8x96xf32>
    %148 = arith.divf %146, %147 : vector<8x96xf32>
    %149 = vector.extract_strided_slice %142 {offsets = [0, 96], sizes = [8, 32], strides = [1, 1]} : vector<8x128xf32> to vector<8x32xf32>
    %150 = math.tanh %149 : vector<8x32xf32>
    %151 = vector.extract_strided_slice %148 {offsets = [0, 0], sizes = [8, 32], strides = [1, 1]} : vector<8x96xf32> to vector<8x32xf32>
    %152 = vector.extract_strided_slice %148 {offsets = [0, 32], sizes = [8, 32], strides = [1, 1]} : vector<8x96xf32> to vector<8x32xf32>
    %153 = vector.extract_strided_slice %148 {offsets = [0, 64], sizes = [8, 32], strides = [1, 1]} : vector<8x96xf32> to vector<8x32xf32>
    %154 = arith.mulf %152, %116 : vector<8x32xf32>
    %155 = arith.mulf %151, %150 : vector<8x32xf32>
    %156 = arith.addf %154, %155 : vector<8x32xf32>
    %157 = math.tanh %156 : vector<8x32xf32>
    %158 = arith.mulf %153, %157 : vector<8x32xf32>
    %cst_37 = arith.constant dense<0.000000e+00> : vector<8x256xf32>
    %159 = tpu.matmul %158, %11, %cst_37 {dimension_numbers = #tpu.dot_dimension_numbers<[1], [0], [0], [1], [0, 0, 1, 1], [], []>} : vector<8x32xf32>, vector<32x256xf32>, vector<8x256xf32> -> vector<8x256xf32>
    %160 = vector.extract_strided_slice %159 {offsets = [0, 128], sizes = [8, 128], strides = [1, 1]} : vector<8x256xf32> to vector<8x128xf32>
    %161 = arith.addf %160, %139 : vector<8x128xf32>
    %162 = vector.extract_strided_slice %161 {offsets = [0, 0], sizes = [8, 96], strides = [1, 1]} : vector<8x128xf32> to vector<8x96xf32>
    %163 = arith.negf %162 : vector<8x96xf32>
    %164 = math.exp %163 : vector<8x96xf32>
    %cst_38 = arith.constant 1.000000e+00 : f32
    %165 = vector.broadcast %cst_38 : f32 to vector<8x96xf32>
    %166 = arith.addf %165, %164 : vector<8x96xf32>
    %167 = arith.divf %165, %166 : vector<8x96xf32>
    %168 = vector.extract_strided_slice %161 {offsets = [0, 96], sizes = [8, 32], strides = [1, 1]} : vector<8x128xf32> to vector<8x32xf32>
    %169 = math.tanh %168 : vector<8x32xf32>
    %170 = vector.extract_strided_slice %167 {offsets = [0, 0], sizes = [8, 32], strides = [1, 1]} : vector<8x96xf32> to vector<8x32xf32>
    %171 = vector.extract_strided_slice %167 {offsets = [0, 32], sizes = [8, 32], strides = [1, 1]} : vector<8x96xf32> to vector<8x32xf32>
    %172 = vector.extract_strided_slice %167 {offsets = [0, 64], sizes = [8, 32], strides = [1, 1]} : vector<8x96xf32> to vector<8x32xf32>
    %173 = arith.mulf %171, %135 : vector<8x32xf32>
    %174 = arith.mulf %170, %169 : vector<8x32xf32>
    %175 = arith.addf %173, %174 : vector<8x32xf32>
    %176 = math.tanh %175 : vector<8x32xf32>
    %177 = arith.mulf %172, %176 : vector<8x32xf32>
    %cst_39 = arith.constant dense<0.000000e+00> : vector<8x128xf32>
    %178 = tpu.matmul %177, %13, %cst_39 {dimension_numbers = #tpu.dot_dimension_numbers<[1], [0], [0], [1], [0, 0, 1, 1], [], []>} : vector<8x32xf32>, vector<32x128xf32>, vector<8x128xf32> -> vector<8x128xf32>
    %179 = arith.addf %178, %17 : vector<8x128xf32>
    %180 = vector.extract_strided_slice %10 {offsets = [32, 0], sizes = [8, 128], strides = [1, 1]} : vector<64x128xf32> to vector<8x128xf32>
    %181 = vector.extract_strided_slice %159 {offsets = [0, 0], sizes = [8, 128], strides = [1, 1]} : vector<8x256xf32> to vector<8x128xf32>
    %182 = arith.addf %180, %181 : vector<8x128xf32>
    %183 = vector.extract_strided_slice %182 {offsets = [0, 0], sizes = [8, 96], strides = [1, 1]} : vector<8x128xf32> to vector<8x96xf32>
    %184 = arith.negf %183 : vector<8x96xf32>
    %185 = math.exp %184 : vector<8x96xf32>
    %cst_40 = arith.constant 1.000000e+00 : f32
    %186 = vector.broadcast %cst_40 : f32 to vector<8x96xf32>
    %187 = arith.addf %186, %185 : vector<8x96xf32>
    %188 = arith.divf %186, %187 : vector<8x96xf32>
    %189 = vector.extract_strided_slice %182 {offsets = [0, 96], sizes = [8, 32], strides = [1, 1]} : vector<8x128xf32> to vector<8x32xf32>
    %190 = math.tanh %189 : vector<8x32xf32>
    %191 = vector.extract_strided_slice %188 {offsets = [0, 0], sizes = [8, 32], strides = [1, 1]} : vector<8x96xf32> to vector<8x32xf32>
    %192 = vector.extract_strided_slice %188 {offsets = [0, 32], sizes = [8, 32], strides = [1, 1]} : vector<8x96xf32> to vector<8x32xf32>
    %193 = vector.extract_strided_slice %188 {offsets = [0, 64], sizes = [8, 32], strides = [1, 1]} : vector<8x96xf32> to vector<8x32xf32>
    %194 = arith.mulf %192, %156 : vector<8x32xf32>
    %195 = arith.mulf %191, %190 : vector<8x32xf32>
    %196 = arith.addf %194, %195 : vector<8x32xf32>
    %197 = math.tanh %196 : vector<8x32xf32>
    %198 = arith.mulf %193, %197 : vector<8x32xf32>
    %cst_41 = arith.constant dense<0.000000e+00> : vector<8x256xf32>
    %199 = tpu.matmul %198, %11, %cst_41 {dimension_numbers = #tpu.dot_dimension_numbers<[1], [0], [0], [1], [0, 0, 1, 1], [], []>} : vector<8x32xf32>, vector<32x256xf32>, vector<8x256xf32> -> vector<8x256xf32>
    %200 = vector.extract_strided_slice %199 {offsets = [0, 128], sizes = [8, 128], strides = [1, 1]} : vector<8x256xf32> to vector<8x128xf32>
    %201 = arith.addf %200, %179 : vector<8x128xf32>
    %202 = vector.extract_strided_slice %201 {offsets = [0, 0], sizes = [8, 96], strides = [1, 1]} : vector<8x128xf32> to vector<8x96xf32>
    %203 = arith.negf %202 : vector<8x96xf32>
    %204 = math.exp %203 : vector<8x96xf32>
    %cst_42 = arith.constant 1.000000e+00 : f32
    %205 = vector.broadcast %cst_42 : f32 to vector<8x96xf32>
    %206 = arith.addf %205, %204 : vector<8x96xf32>
    %207 = arith.divf %205, %206 : vector<8x96xf32>
    %208 = vector.extract_strided_slice %201 {offsets = [0, 96], sizes = [8, 32], strides = [1, 1]} : vector<8x128xf32> to vector<8x32xf32>
    %209 = math.tanh %208 : vector<8x32xf32>
    %210 = vector.extract_strided_slice %207 {offsets = [0, 0], sizes = [8, 32], strides = [1, 1]} : vector<8x96xf32> to vector<8x32xf32>
    %211 = vector.extract_strided_slice %207 {offsets = [0, 32], sizes = [8, 32], strides = [1, 1]} : vector<8x96xf32> to vector<8x32xf32>
    %212 = vector.extract_strided_slice %207 {offsets = [0, 64], sizes = [8, 32], strides = [1, 1]} : vector<8x96xf32> to vector<8x32xf32>
    %213 = arith.mulf %211, %175 : vector<8x32xf32>
    %214 = arith.mulf %210, %209 : vector<8x32xf32>
    %215 = arith.addf %213, %214 : vector<8x32xf32>
    %216 = math.tanh %215 : vector<8x32xf32>
    %217 = arith.mulf %212, %216 : vector<8x32xf32>
    %cst_43 = arith.constant dense<0.000000e+00> : vector<8x128xf32>
    %218 = tpu.matmul %217, %13, %cst_43 {dimension_numbers = #tpu.dot_dimension_numbers<[1], [0], [0], [1], [0, 0, 1, 1], [], []>} : vector<8x32xf32>, vector<32x128xf32>, vector<8x128xf32> -> vector<8x128xf32>
    %219 = arith.addf %218, %17 : vector<8x128xf32>
    %220 = vector.extract_strided_slice %10 {offsets = [40, 0], sizes = [8, 128], strides = [1, 1]} : vector<64x128xf32> to vector<8x128xf32>
    %221 = vector.extract_strided_slice %199 {offsets = [0, 0], sizes = [8, 128], strides = [1, 1]} : vector<8x256xf32> to vector<8x128xf32>
    %222 = arith.addf %220, %221 : vector<8x128xf32>
    %223 = vector.extract_strided_slice %222 {offsets = [0, 0], sizes = [8, 96], strides = [1, 1]} : vector<8x128xf32> to vector<8x96xf32>
    %224 = arith.negf %223 : vector<8x96xf32>
    %225 = math.exp %224 : vector<8x96xf32>
    %cst_44 = arith.constant 1.000000e+00 : f32
    %226 = vector.broadcast %cst_44 : f32 to vector<8x96xf32>
    %227 = arith.addf %226, %225 : vector<8x96xf32>
    %228 = arith.divf %226, %227 : vector<8x96xf32>
    %229 = vector.extract_strided_slice %222 {offsets = [0, 96], sizes = [8, 32], strides = [1, 1]} : vector<8x128xf32> to vector<8x32xf32>
    %230 = math.tanh %229 : vector<8x32xf32>
    %231 = vector.extract_strided_slice %228 {offsets = [0, 0], sizes = [8, 32], strides = [1, 1]} : vector<8x96xf32> to vector<8x32xf32>
    %232 = vector.extract_strided_slice %228 {offsets = [0, 32], sizes = [8, 32], strides = [1, 1]} : vector<8x96xf32> to vector<8x32xf32>
    %233 = vector.extract_strided_slice %228 {offsets = [0, 64], sizes = [8, 32], strides = [1, 1]} : vector<8x96xf32> to vector<8x32xf32>
    %234 = arith.mulf %232, %196 : vector<8x32xf32>
    %235 = arith.mulf %231, %230 : vector<8x32xf32>
    %236 = arith.addf %234, %235 : vector<8x32xf32>
    %237 = math.tanh %236 : vector<8x32xf32>
    %238 = arith.mulf %233, %237 : vector<8x32xf32>
    %cst_45 = arith.constant dense<0.000000e+00> : vector<8x256xf32>
    %239 = tpu.matmul %238, %11, %cst_45 {dimension_numbers = #tpu.dot_dimension_numbers<[1], [0], [0], [1], [0, 0, 1, 1], [], []>} : vector<8x32xf32>, vector<32x256xf32>, vector<8x256xf32> -> vector<8x256xf32>
    %240 = vector.extract_strided_slice %239 {offsets = [0, 128], sizes = [8, 128], strides = [1, 1]} : vector<8x256xf32> to vector<8x128xf32>
    %241 = arith.addf %240, %219 : vector<8x128xf32>
    %242 = vector.extract_strided_slice %241 {offsets = [0, 0], sizes = [8, 96], strides = [1, 1]} : vector<8x128xf32> to vector<8x96xf32>
    %243 = arith.negf %242 : vector<8x96xf32>
    %244 = math.exp %243 : vector<8x96xf32>
    %cst_46 = arith.constant 1.000000e+00 : f32
    %245 = vector.broadcast %cst_46 : f32 to vector<8x96xf32>
    %246 = arith.addf %245, %244 : vector<8x96xf32>
    %247 = arith.divf %245, %246 : vector<8x96xf32>
    %248 = vector.extract_strided_slice %241 {offsets = [0, 96], sizes = [8, 32], strides = [1, 1]} : vector<8x128xf32> to vector<8x32xf32>
    %249 = math.tanh %248 : vector<8x32xf32>
    %250 = vector.extract_strided_slice %247 {offsets = [0, 0], sizes = [8, 32], strides = [1, 1]} : vector<8x96xf32> to vector<8x32xf32>
    %251 = vector.extract_strided_slice %247 {offsets = [0, 32], sizes = [8, 32], strides = [1, 1]} : vector<8x96xf32> to vector<8x32xf32>
    %252 = vector.extract_strided_slice %247 {offsets = [0, 64], sizes = [8, 32], strides = [1, 1]} : vector<8x96xf32> to vector<8x32xf32>
    %253 = arith.mulf %251, %215 : vector<8x32xf32>
    %254 = arith.mulf %250, %249 : vector<8x32xf32>
    %255 = arith.addf %253, %254 : vector<8x32xf32>
    %256 = math.tanh %255 : vector<8x32xf32>
    %257 = arith.mulf %252, %256 : vector<8x32xf32>
    %cst_47 = arith.constant dense<0.000000e+00> : vector<8x128xf32>
    %258 = tpu.matmul %257, %13, %cst_47 {dimension_numbers = #tpu.dot_dimension_numbers<[1], [0], [0], [1], [0, 0, 1, 1], [], []>} : vector<8x32xf32>, vector<32x128xf32>, vector<8x128xf32> -> vector<8x128xf32>
    %259 = arith.addf %258, %17 : vector<8x128xf32>
    %260 = vector.extract_strided_slice %10 {offsets = [48, 0], sizes = [8, 128], strides = [1, 1]} : vector<64x128xf32> to vector<8x128xf32>
    %261 = vector.extract_strided_slice %239 {offsets = [0, 0], sizes = [8, 128], strides = [1, 1]} : vector<8x256xf32> to vector<8x128xf32>
    %262 = arith.addf %260, %261 : vector<8x128xf32>
    %263 = vector.extract_strided_slice %262 {offsets = [0, 0], sizes = [8, 96], strides = [1, 1]} : vector<8x128xf32> to vector<8x96xf32>
    %264 = arith.negf %263 : vector<8x96xf32>
    %265 = math.exp %264 : vector<8x96xf32>
    %cst_48 = arith.constant 1.000000e+00 : f32
    %266 = vector.broadcast %cst_48 : f32 to vector<8x96xf32>
    %267 = arith.addf %266, %265 : vector<8x96xf32>
    %268 = arith.divf %266, %267 : vector<8x96xf32>
    %269 = vector.extract_strided_slice %262 {offsets = [0, 96], sizes = [8, 32], strides = [1, 1]} : vector<8x128xf32> to vector<8x32xf32>
    %270 = math.tanh %269 : vector<8x32xf32>
    %271 = vector.extract_strided_slice %268 {offsets = [0, 0], sizes = [8, 32], strides = [1, 1]} : vector<8x96xf32> to vector<8x32xf32>
    %272 = vector.extract_strided_slice %268 {offsets = [0, 32], sizes = [8, 32], strides = [1, 1]} : vector<8x96xf32> to vector<8x32xf32>
    %273 = vector.extract_strided_slice %268 {offsets = [0, 64], sizes = [8, 32], strides = [1, 1]} : vector<8x96xf32> to vector<8x32xf32>
    %274 = arith.mulf %272, %236 : vector<8x32xf32>
    %275 = arith.mulf %271, %270 : vector<8x32xf32>
    %276 = arith.addf %274, %275 : vector<8x32xf32>
    %277 = math.tanh %276 : vector<8x32xf32>
    %278 = arith.mulf %273, %277 : vector<8x32xf32>
    %cst_49 = arith.constant dense<0.000000e+00> : vector<8x256xf32>
    %279 = tpu.matmul %278, %11, %cst_49 {dimension_numbers = #tpu.dot_dimension_numbers<[1], [0], [0], [1], [0, 0, 1, 1], [], []>} : vector<8x32xf32>, vector<32x256xf32>, vector<8x256xf32> -> vector<8x256xf32>
    %280 = vector.extract_strided_slice %279 {offsets = [0, 128], sizes = [8, 128], strides = [1, 1]} : vector<8x256xf32> to vector<8x128xf32>
    %281 = arith.addf %280, %259 : vector<8x128xf32>
    %282 = vector.extract_strided_slice %281 {offsets = [0, 0], sizes = [8, 96], strides = [1, 1]} : vector<8x128xf32> to vector<8x96xf32>
    %283 = arith.negf %282 : vector<8x96xf32>
    %284 = math.exp %283 : vector<8x96xf32>
    %cst_50 = arith.constant 1.000000e+00 : f32
    %285 = vector.broadcast %cst_50 : f32 to vector<8x96xf32>
    %286 = arith.addf %285, %284 : vector<8x96xf32>
    %287 = arith.divf %285, %286 : vector<8x96xf32>
    %288 = vector.extract_strided_slice %281 {offsets = [0, 96], sizes = [8, 32], strides = [1, 1]} : vector<8x128xf32> to vector<8x32xf32>
    %289 = math.tanh %288 : vector<8x32xf32>
    %290 = vector.extract_strided_slice %287 {offsets = [0, 0], sizes = [8, 32], strides = [1, 1]} : vector<8x96xf32> to vector<8x32xf32>
    %291 = vector.extract_strided_slice %287 {offsets = [0, 32], sizes = [8, 32], strides = [1, 1]} : vector<8x96xf32> to vector<8x32xf32>
    %292 = vector.extract_strided_slice %287 {offsets = [0, 64], sizes = [8, 32], strides = [1, 1]} : vector<8x96xf32> to vector<8x32xf32>
    %293 = arith.mulf %291, %255 : vector<8x32xf32>
    %294 = arith.mulf %290, %289 : vector<8x32xf32>
    %295 = arith.addf %293, %294 : vector<8x32xf32>
    %296 = math.tanh %295 : vector<8x32xf32>
    %297 = arith.mulf %292, %296 : vector<8x32xf32>
    %298 = tpu.concatenate %217, %257, %297 in 0 : vector<8x32xf32>, vector<8x32xf32>, vector<8x32xf32> -> vector<24x32xf32>
    %cst_51 = arith.constant 0.000000e+00 : f32
    %299 = vector.broadcast %cst_51 : f32 to vector<24x32xf32>
    %300 = arith.maximumf %298, %299 : vector<24x32xf32>
    %cst_52 = arith.constant dense<0.000000e+00> : vector<24x2xf32>
    %301 = tpu.matmul %300, %18, %cst_52 {dimension_numbers = #tpu.dot_dimension_numbers<[1], [0], [0], [1], [0, 0, 1, 1], [], []>} : vector<24x32xf32>, vector<32x2xf32>, vector<24x2xf32> -> vector<24x2xf32>
    %302 = vector.broadcast %19 : vector<1x2xf32> to vector<24x2xf32>
    %303 = arith.addf %301, %302 : vector<24x2xf32>
    %c0_53 = arith.constant 0 : index
    %c0_54 = arith.constant 0 : index
    %304 = vector.load %arg11[%c0_53, %c0_54] : memref<24x2xf32, #tpu.memory_space<vmem>>, vector<24x2xf32>
    tpu.vector_store %arg11[%c0_53, %c0_54], %303 {strides = array<i32>} : memref<24x2xf32, #tpu.memory_space<vmem>>, vector<24x2xf32>,
    return
  }
}

</mosaic_0001>

<bundles_post_ra>
// kernel: tpu_custom_call.1
= control target key start
LH: loop header
LB: loop body
LE: loop exit
PB: predicated region body
PF: predicated region fallthrough
CT: control target
= control target key end

     0   :  { %16 = vsyncpa [#allocation3], 0  ;;  %s2007_s0 = inlined_call_operand.vmem [shape: f32[64,4], index: 0, kind: input, shape index: {}]   ;;  %s2008_s1 = inlined_call_operand.hbm [shape: f32[4,32], index: 1, kind: input, shape index: {}]   ;;  %s2009_s2 = inlined_call_operand.vmem [shape: f32[1,32], index: 2, kind: input, shape index: {}]   ;;  %s2010_s3 = inlined_call_operand.vmem [shape: f32[32,128], index: 3, kind: input, shape index: {}]   ;;  %s2011_s4 = inlined_call_operand.vmem [shape: f32[1,128], index: 4, kind: input, shape index: {}]   ;;  %s2012_s5 = inlined_call_operand.vmem [shape: f32[32,256], index: 5, kind: input, shape index: {}]   ;;  %s2013_s6 = inlined_call_operand.hbm [shape: f32[1,32,128], index: 6, kind: input, shape index: {}]   ;;  %s2014_s7 = inlined_call_operand.vmem [shape: f32[1,1,128], index: 7, kind: input, shape index: {}]   ;;  %s2015_s8 = inlined_call_operand.hbm [shape: f32[1,32,128], index: 8, kind: input, shape index: {}]   ;;  %s2016_s9 = inlined_call_operand.vmem [shape: f32[32,2], index: 9, kind: input, shape index: {}]   ;;  %s2017_s10 = inlined_call_operand.vmem [shape: f32[1,2], index: 10, kind: input, shape index: {}]   ;;  %s2018_s11 = inlined_call_operand.vmem [shape: f32[24,2], index: 11, kind: output, shape index: {}]  }
   0x1   :  { %17 = vsyncpa [#allocation5], 0  ;;  %s43_s19 = sshll.u32 %s2013_s6, 4  ;;  %s1547_s20 = smov [#allocation4]   ;;  %s44_s19 = int_to_ptr.hbm [resolvable:$true] %s43_s19 }
   0x2   :  { %s45_s21 = sshll.u32 %s1547_s20, 4  ;;  %s25_s24 = sshll.u32 %s2008_s1, 4  ;;  %s46_s21 = int_to_ptr.vmem [resolvable:$true] %s45_s21  ;;  %s26_s24 = int_to_ptr.hbm [resolvable:$true] %s25_s24 }
   0x3   :  { %s1548_s25 = smov 128   ;;  %s1549_s26 = smov 8  }
   0x4   :  { %51 = dma.hbm_to_vmem [thread:$0]  %s44_s19, 512, %s46_s21, [#allocation5], %s1548_s25, %s1548_s25, %s1549_s26  }
   0x5   :  { %s1550_s27 = smov [#allocation2]   ;;  %s58_s12 = sshll.u32 %s2015_s8, 4  ;;  %s59_s12 = int_to_ptr.hbm [resolvable:$true] %s58_s12 }
   0x6   :  { %s27_s28 = sshll.u32 %s1550_s27, 4  ;;  %s1551_s6 = smov [#allocation6]   ;;  %s28_s28 = int_to_ptr.vmem [resolvable:$true] %s27_s28 }
   0x7   :  { %30 = dma.hbm_to_vmem [thread:$0]  %s26_s24, 64, %s28_s28, [#allocation3]  }
   0x8   :  { %s60_s13 = sshll.u32 %s1551_s6, 4  ;;  %s61_s13 = int_to_ptr.vmem [resolvable:$true] %s60_s13 }
   0x9   :  { %66 = dma.hbm_to_vmem [thread:$0]  %s59_s12, 512, %s61_s13, [#allocation5], %s1548_s25, %s1548_s25, %s1549_s26  }
   0xa   :  { %1543 = dma.done.wait [#allocation3], 64  }
   0xb   :  { %1544 = vsyncadd [#allocation3], 4294967232 }
   0xc   :  { %1545 = dma.done.wait [#allocation5], 1024  }
   0xd   :  { %1546 = vsyncadd [#allocation5], 4294966272  ;;  %vm121_vm0 = vcmask 1043456   ;;  %vm96_vm1 = vcmask 31744   ;;  %v91_v0 = vld [vmem:[#allocation2] sm:$0xf] }
   0xe   :  { %v83_v1 = vld [vmem:[%s2007_s0] sm:$0xff]  ;;  %v169_v2 = vld [vmem:[%s2010_s3 + $0x18] sm:$0xff]  ;;  %1293 = vmatpush.msk.msra.mxu0 %vm121_vm0, %v91_v0  ;;  %v168_v3 = vld [vmem:[%s2010_s3 + $0x10] sm:$0xff]  ;;  %vm174_vm2 = vcmask 261120   ;;  %s1553_s29 = smov 64  }
   0xf   :  { %211 = vmatpush.msra.mxu1 %v169_v2  ;;  %1294 = vmatmul.msk.f32.vlgmr.msra.gmra.mxu0 %vm96_vm1, %v83_v1  ;;  %v167_v4 = vld [vmem:[%s2010_s3 + $0x8] sm:$0xff]  ;;  %v166_v5 = vld [vmem:[%s2010_s3] sm:$0xff]  ;;  %s1552_s3 = smov 32   ;;  %v1665_v33 = vld [vmem:[%s2012_s5 + $0x38] sm:$0xff] }
  0x10   :  { %v1642_v6 = vld [vmem:[%s2009_s2] ss:$0 sm:$0xff]  ;;  %v84_v28 = vld [vmem:[%s2007_s0 + $0x8] sm:$0xff]  ;;  %v85_v34 = vld [vmem:[%s2007_s0 + $0x10] sm:$0xff]  ;;  %334 = vmatpush.msrb.mxu0 %v1665_v33 }
  0x11   :  { %212 = vmatpush.msra.mxu1 %v168_v3  ;;  %v1649_v9 = vld [vmem:[%s2011_s4] ss:$0 sm:$0xff]  ;;  %v1673_v35 = vld [vmem:[%s2012_s5 + $0x28] sm:$0xff]  ;;  %v1680_v36 = vld [vmem:[%s2012_s5 + $0x18] sm:$0xff] }
  0x12   :  { %335 = vmatpush.msrb.mxu0 %v1673_v35  ;;  %v1686_v37 = vld [vmem:[%s2012_s5 + $0x8] sm:$0xff]  ;;  %v86_v38 = vld [vmem:[%s2007_s0 + $0x18] sm:$0xff]  ;;  %v1698_v39 = vld [vmem:[%s2012_s5 + $0x30] sm:$0xff] }
  0x13   :  { %213 = vmatpush.msra.mxu1 %v167_v4  ;;  %v1703_v40 = vld [vmem:[%s2012_s5 + $0x20] sm:$0xff]  ;;  %314 = vmatpush.msra.mxu2 %v1698_v39  ;;  %v1710_v41 = vld [vmem:[%s2012_s5 + $0x10] sm:$0xff]  ;;  %v88_v44 = vld [vmem:[%s2007_s0 + $0x28] sm:$0xff] }
  0x14   :  { %336 = vmatpush.msrb.mxu0 %v1680_v36  ;;  %460 = vmatpush.msra.mxu3 %v1698_v39  ;;  %v1718_v42 = vld [vmem:[%s2012_s5] sm:$0xff]  ;;  %v89_v47 = vld [vmem:[%s2007_s0 + $0x30] sm:$0xff]  ;;  %v90_v48 = vld [vmem:[%s2007_s0 + $0x38] sm:$0xff] }
  0x15   :  { %214 = vmatpush.msra.mxu1 %v166_v5  ;;  %315 = vmatpush.msra.mxu2 %v1703_v40  ;;  %v87_v43 = vld [vmem:[%s2007_s0 + $0x20] sm:$0xff] }
  0x16   :  { %337 = vmatpush.msrb.mxu0 %v1686_v37  ;;  %461 = vmatpush.msra.mxu3 %v1703_v40  ;;  %v1762_v0 = vld [vmem:[%s2014_s7] ss:$0 sm:$0xff] }
  0x17   :  { %1295 = vmatmul.msk.f32.gmra.mxu0 %vm96_vm1, %v84_v28  ;;  %316 = vmatpush.msra.mxu2 %v1710_v41 }
  0x18   :  { %1064 = vmatpush.msra.mxu0 %v1665_v33  ;;  %462 = vmatpush.msra.mxu3 %v1710_v41 }
  0x19   :  { %317 = vmatpush.msra.mxu2 %v1718_v42 }
  0x1a   :  { %1065 = vmatpush.msra.mxu0 %v1673_v35  ;;  %463 = vmatpush.msra.mxu3 %v1718_v42 }
  0x1c   :  { %1066 = vmatpush.msra.mxu0 %v1680_v36 }
  0x1e   :  { %1067 = vmatpush.msra.mxu0 %v1686_v37 }
  0x1f   :  { %1296 = vmatmul.msk.f32.gmra.mxu0 %vm96_vm1, %v85_v34 }
  0x27   :  { %1297 = vmatmul.msk.f32.gmra.mxu0 %vm96_vm1, %v86_v38 }
  0x2f   :  { %1298 = vmatmul.msk.f32.gmra.mxu0 %vm96_vm1, %v87_v43 }
  0x37   :  { %1299 = vmatmul.msk.f32.gmra.mxu0 %vm96_vm1, %v88_v44 }
  0x3f   :  { %1300 = vmatmul.msk.f32.gmra.mxu0 %vm96_vm1, %v89_v47 }
  0x47   :  { %1301 = vmatmul.msk.f32.gmra.mxu0 %vm96_vm1, %v90_v48 }
  0x8c   :  { %v142_v7 = vpop.f32.mrf.mxu0 }
  0x8d   :  { %v143_v8 = vadd.f32 %v1642_v6, %v142_v7 }
  0x8f   :  { %1302 = vmatmul.msk.f32.vlgmr.msra.gmra.mxu1 %vm174_vm2, %v143_v8 }
  0x94   :  { %v145_v49 = vpop.f32.mrf.mxu0 }
  0x95   :  { %v146_v50 = vadd.f32 %v1642_v6, %v145_v49 }
  0x97   :  { %1303 = vmatmul.msk.f32.gmra.mxu1 %vm174_vm2, %v146_v50 }
  0x9c   :  { %v148_v51 = vpop.f32.mrf.mxu0 }
  0x9d   :  { %v149_v52 = vadd.f32 %v1642_v6, %v148_v51 }
  0x9f   :  { %1304 = vmatmul.msk.f32.gmra.mxu1 %vm174_vm2, %v149_v52 }
  0xa4   :  { %v151_v53 = vpop.f32.mrf.mxu0 }
  0xa5   :  { %v152_v54 = vadd.f32 %v1642_v6, %v151_v53 }
  0xa7   :  { %1305 = vmatmul.msk.f32.gmra.mxu1 %vm174_vm2, %v152_v54 }
  0xac   :  { %v154_v55 = vpop.f32.mrf.mxu0 }
  0xad   :  { %v155_v56 = vadd.f32 %v1642_v6, %v154_v55 }
  0xaf   :  { %1306 = vmatmul.msk.f32.gmra.mxu1 %vm174_vm2, %v155_v56 }
  0xb4   :  { %v157_v58 = vpop.f32.mrf.mxu0 }
  0xb5   :  { %v158_v59 = vadd.f32 %v1642_v6, %v157_v58 }
  0xb7   :  { %1307 = vmatmul.msk.f32.gmra.mxu1 %vm174_vm2, %v158_v59 }
  0xbc   :  { %v160_v60 = vpop.f32.mrf.mxu0 }
  0xbd   :  { %v161_v61 = vadd.f32 %v1642_v6, %v160_v60 }
  0xbf   :  { %1308 = vmatmul.msk.f32.gmra.mxu1 %vm174_vm2, %v161_v61 }
  0xc4   :  { %v163_v62 = vpop.f32.mrf.mxu0 }
  0xc5   :  { %v164_v63 = vadd.f32 %v1642_v6, %v163_v62 }
  0xc7   :  { %1309 = vmatmul.msk.f32.gmra.mxu1 %vm174_vm2, %v164_v63 }
 0x10c   :  { %v216_v10 = vpop.f32.mrf.mxu1 }
 0x10d   :  { %v217_v11 = vadd.f32 %v1649_v9, %v216_v10 }
 0x10f   :  { %1357 = vtanh.f32 %v217_v11  ;;  %v1310_v13 = vmul.f32 -1.442695, %v217_v11 }
 0x111   :  { %1359 = vpow2.f32 %v1310_v13 }
 0x114   :  { %v219_v2 = vpop.f32.mrf.mxu1 }
 0x115   :  { %v1358_v12 = vpop.eup %1357  ;;  %v220_v4 = vadd.f32 %v1649_v9, %v219_v2  ;;  %v1790_v2 = vld [vmem:[#allocation4 + $0x18] sm:$0xff] }
 0x116   :  { %282 = vrot.lane.b32.xlu0 %v1358_v12, %s1552_s3  ;;  %397 = vmatpush.msrb.mxu2 %v1790_v2 }
 0x117   :  { %v1360_v14 = vpop.eup %1359  ;;  %543 = vmatpush.msrb.mxu3 %v1790_v2  ;;  %1127 = vmatpush.msrb.mxu1 %v1790_v2 }
 0x118   :  { %v263_v15 = vadd.f32 1.0, %v1360_v14 }
 0x11a   :  { %1361 = vrcp.f32 %v263_v15  ;;  %v275_v21 = vand.u32 2147483648, %v263_v15  ;;  %vm269_vm4 = vweird.f32 %v263_v15  ;;  %v273_v22 = vand.u32 2147483647, %v263_v15 }
 0x11c   :  { %v276_v24 = vor.u32 1.1754944e-38, %v275_v21  ;;  %vm274_vm6 = vcmp.eq.f32.partialorder %v273_v22, 8.507059e+37  ;;  %v1768_v10 = vpop.f32.mrf.mxu1 }
 0x120   :  { %v1362_v16 = vpop.eup %1361 }
 0x121   :  { %v265_v17 = vmul.f32 %v1362_v16, %v263_v15  ;;  %vm270_vm3 = vweird.f32 %v1362_v16 }
 0x122   :  { %vm271_vm5 = vmor %vm269_vm4, %vm270_vm3 }
 0x123   :  { %v266_v18 = vsub.f32 1.0, %v265_v17 }
 0x124   :  { %v1770_v11 = vpop.f32.mrf.mxu1 }
 0x125   :  { %v267_v19 = vmul.f32 %v1362_v16, %v266_v18 }
 0x127   :  { %v268_v20 = vadd.f32 %v1362_v16, %v267_v19 }
 0x129   :  { %v272_v23 = vsel %vm271_vm5, %v1362_v16, %v268_v20 }
 0x12a   :  { %v277_v26 = vsel %vm274_vm6, %v276_v24, %v272_v23 }
 0x12b   :  { %v280_v29 = vmul.f32 0.0, %v277_v26 }
 0x12c   :  { %v1772_v13 = vpop.f32.mrf.mxu1 }
 0x134   :  { %v1774_v17 = vpop.f32.mrf.mxu1 }
 0x13c   :  { %v1776_v21 = vpop.f32.mrf.mxu1 }
 0x188   :  { %v283_v25 = vpop.permute.xlu0 %282 }
 0x189   :  { %v285_v27 = vmul.f32 %v283_v25, %v277_v26  ;;  %v237_v25 = vpop.f32.mrf.mxu1 }
 0x18b   :  { %287 = vrot.lane.b32.xlu0 %v285_v27, %s1552_s3 }
 0x1fd   :  { %v288_v30 = vpop.permute.xlu0 %287 }
 0x1fe   :  { %v1658_v31 = vadd.f32 %v288_v30, %v280_v29 }
 0x200   :  { %1363 = vtanh.f32 %v1658_v31 }
 0x206   :  { %v1364_v32 = vpop.eup %1363 }
 0x207   :  { %293 = vrot.lane.b32.xlu1 %v1364_v32, %s1552_s3 }
 0x279   :  { %v294_v45 = vpop.permute.xlu1 %293 }
 0x27a   :  { %v296_v46 = vmul.f32 %v294_v45, %v277_v26 }
 0x27c   :  { %298 = vrot.lane.b32.xlu1 %v296_v46, %s1553_s29 }
 0x2ee   :  { %v299_v57 = vpop.permute.xlu1 %298 }
 0x2ef   :  { %1311 = vmatmul.msk.f32.vlgmr.msra.gmra.mxu2 %vm174_vm2, %v299_v57  ;;  %1312 = vmatmul.msk.f32.vlgmr.msrb.gmra.mxu0 %vm174_vm2, %v299_v57 }
 0x36c   :  { %v339_v1 = vpop.f32.mrf.mxu0 }
 0x36d   :  { %v342_v3 = vadd.f32 %v1762_v0, %v339_v1 }
 0x36f   :  { %1365 = vtanh.f32 %v342_v3  ;;  %v1313_v12 = vmul.f32 -1.442695, %v342_v3  ;;  %v1792_v3 = vld [vmem:[#allocation4 + $0x10] sm:$0xff] }
 0x370   :  { %398 = vmatpush.msrb.mxu2 %v1792_v3  ;;  %544 = vmatpush.msrb.mxu3 %v1792_v3 }
 0x371   :  { %1128 = vmatpush.msrb.mxu1 %v1792_v3 }
 0x372   :  { %v319_v5 = vpop.f32.mrf.mxu2 }
 0x373   :  { %v405_v7 = vadd.f32 %v319_v5, %v220_v4  ;;  %v1801_v4 = vld [vmem:[#allocation4] sm:$0xff] }
 0x375   :  { %v1366_v8 = vpop.eup %1365  ;;  %1367 = vtanh.f32 %v405_v7  ;;  %v1315_v14 = vmul.f32 -1.442695, %v405_v7 }
 0x376   :  { %365 = vrot.lane.b32.xlu2 %v1366_v8, %s1552_s3  ;;  %1369 = vpow2.f32 %v1313_v12 }
 0x377   :  { %1371 = vpow2.f32 %v1315_v14  ;;  %v223_v14 = vadd.f32 %v1649_v9, %v1768_v10 }
 0x37b   :  { %v1368_v6 = vpop.eup %1367 }
 0x37c   :  { %v1370_v15 = vpop.eup %1369 }
 0x37d   :  { %v346_v16 = vadd.f32 1.0, %v1370_v15  ;;  %v1372_v18 = vpop.eup %1371 }
 0x37e   :  { %428 = vrot.lane.b32.xlu2 %v1368_v6, %s1552_s3  ;;  %v409_v19 = vadd.f32 1.0, %v1372_v18 }
 0x37f   :  { %1373 = vrcp.f32 %v346_v16  ;;  %v358_v30 = vand.u32 2147483648, %v346_v16  ;;  %vm352_vm8 = vweird.f32 %v346_v16  ;;  %v356_v32 = vand.u32 2147483647, %v346_v16 }
 0x380   :  { %1375 = vrcp.f32 %v409_v19  ;;  %v421_v48 = vand.u32 2147483648, %v409_v19  ;;  %vm415_vm12 = vweird.f32 %v409_v19  ;;  %v419_v49 = vand.u32 2147483647, %v409_v19 }
 0x381   :  { %v359_v43 = vor.u32 1.1754944e-38, %v358_v30  ;;  %vm357_vm10 = vcmp.eq.f32.partialorder %v356_v32, 8.507059e+37 }
 0x382   :  { %v422_v51 = vor.u32 1.1754944e-38, %v421_v48  ;;  %vm420_vm14 = vcmp.eq.f32.partialorder %v419_v49, 8.507059e+37 }
 0x385   :  { %v1374_v20 = vpop.eup %1373 }
 0x386   :  { %v348_v22 = vmul.f32 %v1374_v20, %v346_v16  ;;  %v1376_v24 = vpop.eup %1375  ;;  %vm353_vm7 = vweird.f32 %v1374_v20 }
 0x387   :  { %v411_v27 = vmul.f32 %v1376_v24, %v409_v19  ;;  %vm354_vm9 = vmor %vm352_vm8, %vm353_vm7  ;;  %vm416_vm11 = vweird.f32 %v1376_v24 }
 0x388   :  { %v349_v23 = vsub.f32 1.0, %v348_v22  ;;  %vm417_vm13 = vmor %vm415_vm12, %vm416_vm11 }
 0x389   :  { %v412_v29 = vsub.f32 1.0, %v411_v27 }
 0x38a   :  { %v350_v26 = vmul.f32 %v1374_v20, %v349_v23 }
 0x38b   :  { %v413_v38 = vmul.f32 %v1376_v24, %v412_v29 }
 0x38c   :  { %v351_v28 = vadd.f32 %v1374_v20, %v350_v26 }
 0x38d   :  { %v414_v47 = vadd.f32 %v1376_v24, %v413_v38 }
 0x38e   :  { %v355_v34 = vsel %vm354_vm9, %v1374_v20, %v351_v28 }
 0x38f   :  { %v360_v45 = vsel %vm357_vm10, %v359_v43, %v355_v34  ;;  %v418_v50 = vsel %vm417_vm13, %v1376_v24, %v414_v47 }
 0x390   :  { %v423_v53 = vsel %vm420_vm14, %v422_v51, %v418_v50  ;;  %v363_v55 = vmul.f32 0.0, %v360_v45 }
 0x391   :  { %v426_v58 = vmul.f32 %v423_v53, %v1658_v31  ;;  %v1796_v31 = vld [vmem:[#allocation4 + $0x8] sm:$0xff] }
 0x392   :  { %399 = vmatpush.msrb.mxu2 %v1796_v31  ;;  %545 = vmatpush.msrb.mxu3 %v1796_v31 }
 0x393   :  { %1129 = vmatpush.msrb.mxu1 %v1796_v31 }
 0x394   :  { %400 = vmatpush.msrb.mxu2 %v1801_v4  ;;  %546 = vmatpush.msrb.mxu3 %v1801_v4 }
 0x395   :  { %1130 = vmatpush.msrb.mxu1 %v1801_v4 }
 0x396   :  { %480 = vmatpush.msra.mxu2 %v1665_v33 }
 0x398   :  { %481 = vmatpush.msra.mxu2 %v1673_v35 }
 0x39a   :  { %482 = vmatpush.msra.mxu2 %v1680_v36 }
 0x39c   :  { %483 = vmatpush.msra.mxu2 %v1686_v37 }
 0x3d0   :  { %v366_v44 = vpop.permute.xlu2 %365 }
 0x3d1   :  { %v368_v46 = vmul.f32 %v366_v44, %v360_v45 }
 0x3d3   :  { %370 = vrot.lane.b32.xlu0 %v368_v46, %s1552_s3 }
 0x3d8   :  { %v429_v52 = vpop.permute.xlu2 %428 }
 0x3d9   :  { %v431_v54 = vmul.f32 %v429_v52, %v423_v53 }
 0x3db   :  { %433 = vrot.lane.b32.xlu1 %v431_v54, %s1552_s3 }
 0x445   :  { %v371_v56 = vpop.permute.xlu0 %370 }
 0x446   :  { %v1780_v57 = vadd.f32 %v371_v56, %v363_v55 }
 0x448   :  { %1377 = vtanh.f32 %v1780_v57 }
 0x44d   :  { %v434_v59 = vpop.permute.xlu1 %433 }
 0x44e   :  { %v1378_v60 = vpop.eup %1377  ;;  %v1784_v61 = vadd.f32 %v434_v59, %v426_v58 }
 0x44f   :  { %376 = vrot.lane.b32.xlu2 %v1378_v60, %s1552_s3 }
 0x450   :  { %1379 = vtanh.f32 %v1784_v61 }
 0x456   :  { %v1380_v62 = vpop.eup %1379 }
 0x457   :  { %439 = vrot.lane.b32.xlu0 %v1380_v62, %s1552_s3 }
 0x4a9   :  { %v377_v63 = vpop.permute.xlu2 %376 }
 0x4aa   :  { %v379_v1 = vmul.f32 %v377_v63, %v360_v45 }
 0x4ac   :  { %381 = vrot.lane.b32.xlu1 %v379_v1, %s1553_s29 }
 0x4c9   :  { %v440_v5 = vpop.permute.xlu0 %439 }
 0x4ca   :  { %v442_v7 = vmul.f32 %v440_v5, %v423_v53 }
 0x4cc   :  { %444 = vrot.lane.b32.xlu2 %v442_v7, %s1553_s29 }
 0x51e   :  { %v382_v8 = vpop.permute.xlu1 %381 }
 0x51f   :  { %1314 = vmatmul.msk.f32.vlgmr.msrb.gmra.mxu2 %vm174_vm2, %v382_v8 }
 0x520   :  { %606 = vmatpush.msrb.mxu2 %v1698_v39 }
 0x522   :  { %607 = vmatpush.msrb.mxu2 %v1703_v40 }
 0x524   :  { %608 = vmatpush.msrb.mxu2 %v1710_v41 }
 0x526   :  { %v445_v6 = vpop.permute.xlu2 %444  ;;  %609 = vmatpush.msrb.mxu2 %v1718_v42 }
 0x527   :  { %1316 = vmatmul.msk.f32.vlgmr.msra.gmra.mxu3 %vm174_vm2, %v445_v6  ;;  %1317 = vmatmul.msk.f32.vlgmr.msra.gmra.mxu2 %vm174_vm2, %v445_v6 }
 0x528   :  { %626 = vmatpush.msra.mxu3 %v1665_v33  ;;  %689 = vmatpush.msra.mxu2 %v1790_v2 }
 0x52a   :  { %627 = vmatpush.msra.mxu3 %v1673_v35  ;;  %690 = vmatpush.msra.mxu2 %v1792_v3 }
 0x52c   :  { %628 = vmatpush.msra.mxu3 %v1680_v36  ;;  %691 = vmatpush.msra.mxu2 %v1796_v31 }
 0x52e   :  { %629 = vmatpush.msra.mxu3 %v1686_v37  ;;  %692 = vmatpush.msra.mxu2 %v1801_v4 }
 0x5a2   :  { %v402_v12 = vpop.f32.mrf.mxu2 }
 0x5a3   :  { %v403_v15 = vadd.f32 %v1762_v0, %v402_v12 }
 0x5aa   :  { %v465_v16 = vpop.f32.mrf.mxu3  ;;  %v485_v18 = vpop.f32.mrf.mxu2 }
 0x5ab   :  { %v551_v19 = vadd.f32 %v465_v16, %v223_v14  ;;  %v488_v20 = vadd.f32 %v485_v18, %v403_v15 }
 0x5ad   :  { %1381 = vtanh.f32 %v551_v19  ;;  %v1320_v24 = vmul.f32 -1.442695, %v551_v19  ;;  %v1318_v25 = vmul.f32 -1.442695, %v488_v20 }
 0x5ae   :  { %1383 = vtanh.f32 %v488_v20 }
 0x5af   :  { %1385 = vpow2.f32 %v1320_v24 }
 0x5b0   :  { %1387 = vpow2.f32 %v1318_v25 }
 0x5b3   :  { %v1382_v22 = vpop.eup %1381 }
 0x5b4   :  { %v1384_v23 = vpop.eup %1383  ;;  %574 = vrot.lane.b32.xlu1 %v1382_v22, %s1552_s3 }
 0x5b5   :  { %511 = vrot.lane.b32.xlu0 %v1384_v23, %s1552_s3  ;;  %v1386_v26 = vpop.eup %1385 }
 0x5b6   :  { %v1388_v10 = vpop.eup %1387  ;;  %v555_v27 = vadd.f32 1.0, %v1386_v26 }
 0x5b7   :  { %v492_v28 = vadd.f32 1.0, %v1388_v10 }
 0x5b8   :  { %1389 = vrcp.f32 %v555_v27  ;;  %v567_v48 = vand.u32 2147483648, %v555_v27  ;;  %vm561_vm1 = vweird.f32 %v555_v27  ;;  %v565_v50 = vand.u32 2147483647, %v555_v27 }
 0x5b9   :  { %1391 = vrcp.f32 %v492_v28  ;;  %v504_v49 = vand.u32 2147483648, %v492_v28  ;;  %vm498_vm3 = vweird.f32 %v492_v28  ;;  %v502_v51 = vand.u32 2147483647, %v492_v28 }
 0x5ba   :  { %v568_v54 = vor.u32 1.1754944e-38, %v567_v48  ;;  %vm566_vm6 = vcmp.eq.f32.partialorder %v565_v50, 8.507059e+37 }
 0x5bb   :  { %v505_v55 = vor.u32 1.1754944e-38, %v504_v49  ;;  %vm503_vm7 = vcmp.eq.f32.partialorder %v502_v51, 8.507059e+37 }
 0x5be   :  { %v1390_v29 = vpop.eup %1389 }
 0x5bf   :  { %v1392_v30 = vpop.eup %1391  ;;  %v557_v32 = vmul.f32 %v1390_v29, %v555_v27  ;;  %vm562_vm15 = vweird.f32 %v1390_v29 }
 0x5c0   :  { %v494_v34 = vmul.f32 %v1392_v30, %v492_v28  ;;  %vm499_vm0 = vweird.f32 %v1392_v30  ;;  %vm563_vm4 = vmor %vm561_vm1, %vm562_vm15 }
 0x5c1   :  { %v558_v38 = vsub.f32 1.0, %v557_v32  ;;  %vm500_vm5 = vmor %vm498_vm3, %vm499_vm0 }
 0x5c2   :  { %v495_v43 = vsub.f32 1.0, %v494_v34 }
 0x5c3   :  { %v559_v44 = vmul.f32 %v1390_v29, %v558_v38 }
 0x5c4   :  { %v496_v45 = vmul.f32 %v1392_v30, %v495_v43 }
 0x5c5   :  { %v560_v46 = vadd.f32 %v1390_v29, %v559_v44 }
 0x5c6   :  { %v497_v47 = vadd.f32 %v1392_v30, %v496_v45 }
 0x5c7   :  { %v564_v52 = vsel %vm563_vm4, %v1390_v29, %v560_v46 }
 0x5c8   :  { %v501_v53 = vsel %vm500_vm5, %v1392_v30, %v497_v47  ;;  %v569_v58 = vsel %vm566_vm6, %v568_v54, %v564_v52 }
 0x5c9   :  { %v506_v60 = vsel %vm503_vm7, %v505_v55, %v501_v53  ;;  %v572_v6 = vmul.f32 %v569_v58, %v1784_v61  ;;  %v226_v61 = vadd.f32 %v1649_v9, %v1770_v11 }
 0x5ca   :  { %v509_v1 = vmul.f32 %v506_v60, %v1780_v57 }
 0x626   :  { %v575_v56 = vpop.permute.xlu1 %574 }
 0x627   :  { %v512_v59 = vpop.permute.xlu0 %511  ;;  %v577_v62 = vmul.f32 %v575_v56, %v569_v58 }
 0x628   :  { %v514_v63 = vmul.f32 %v512_v59, %v506_v60 }
 0x629   :  { %579 = vrot.lane.b32.xlu0 %v577_v62, %s1552_s3 }
 0x62a   :  { %516 = vrot.lane.b32.xlu2 %v514_v63, %s1552_s3 }
 0x684   :  { %v517_v5 = vpop.permute.xlu2 %516 }
 0x685   :  { %v1838_v7 = vadd.f32 %v517_v5, %v509_v1 }
 0x687   :  { %1393 = vtanh.f32 %v1838_v7 }
 0x68d   :  { %v1394_v8 = vpop.eup %1393 }
 0x68e   :  { %522 = vrot.lane.b32.xlu1 %v1394_v8, %s1552_s3 }
 0x69b   :  { %v580_v12 = vpop.permute.xlu0 %579 }
 0x69c   :  { %v1843_v14 = vadd.f32 %v580_v12, %v572_v6 }
 0x69e   :  { %1395 = vtanh.f32 %v1843_v14 }
 0x6a4   :  { %v1396_v15 = vpop.eup %1395 }
 0x6a5   :  { %585 = vrot.lane.b32.xlu2 %v1396_v15, %s1552_s3 }
 0x6ff   :  { %v586_v16 = vpop.permute.xlu2 %585 }
 0x700   :  { %v523_v57 = vpop.permute.xlu1 %522  ;;  %v588_v18 = vmul.f32 %v586_v16, %v569_v58 }
 0x701   :  { %v525_v19 = vmul.f32 %v523_v57, %v506_v60 }
 0x702   :  { %590 = vrot.lane.b32.xlu1 %v588_v18, %s1553_s29 }
 0x703   :  { %527 = vrot.lane.b32.xlu0 %v525_v19, %s1553_s29 }
 0x774   :  { %v591_v20 = vpop.permute.xlu1 %590 }
 0x775   :  { %v528_v22 = vpop.permute.xlu0 %527  ;;  %1321 = vmatmul.msk.f32.vlgmr.msrb.gmra.mxu2 %vm174_vm2, %v591_v20 }
 0x776   :  { %1319 = vmatmul.msk.f32.vlgmr.msrb.gmra.mxu3 %vm174_vm2, %v528_v22  ;;  %772 = vmatpush.msrb.mxu2 %v1665_v33 }
 0x777   :  { %752 = vmatpush.msrb.mxu3 %v1698_v39 }
 0x778   :  { %773 = vmatpush.msrb.mxu2 %v1673_v35 }
 0x779   :  { %753 = vmatpush.msrb.mxu3 %v1703_v40 }
 0x77a   :  { %774 = vmatpush.msrb.mxu2 %v1680_v36 }
 0x77b   :  { %754 = vmatpush.msrb.mxu3 %v1710_v41 }
 0x77c   :  { %775 = vmatpush.msrb.mxu2 %v1686_v37 }
 0x77d   :  { %755 = vmatpush.msrb.mxu3 %v1718_v42 }
 0x77e   :  { %1322 = vmatmul.msk.f32.vlgmr.msra.gmra.mxu3 %vm174_vm2, %v591_v20 }
 0x77f   :  { %835 = vmatpush.msra.mxu3 %v1790_v2 }
 0x781   :  { %836 = vmatpush.msra.mxu3 %v1792_v3 }
 0x783   :  { %837 = vmatpush.msra.mxu3 %v1796_v31 }
 0x785   :  { %838 = vmatpush.msra.mxu3 %v1801_v4 }
 0x7f8   :  { %v611_v23 = vpop.f32.mrf.mxu2 }
 0x7f9   :  { %v548_v24 = vpop.f32.mrf.mxu3  ;;  %v697_v25 = vadd.f32 %v611_v23, %v226_v61 }
 0x7fa   :  { %v549_v26 = vadd.f32 %v1762_v0, %v548_v24 }
 0x7fb   :  { %1397 = vtanh.f32 %v697_v25  ;;  %v1325_v11 = vmul.f32 -1.442695, %v697_v25 }
 0x801   :  { %v1398_v10 = vpop.eup %1397  ;;  %v631_v27 = vpop.f32.mrf.mxu3 }
 0x802   :  { %v634_v28 = vadd.f32 %v631_v27, %v549_v26  ;;  %720 = vrot.lane.b32.xlu0 %v1398_v10, %s1552_s3 }
 0x804   :  { %1399 = vtanh.f32 %v634_v28  ;;  %v1323_v30 = vmul.f32 -1.442695, %v634_v28  ;;  %v229_v28 = vadd.f32 %v1649_v9, %v1772_v13 }
 0x806   :  { %1401 = vpow2.f32 %v1323_v30 }
 0x80a   :  { %v1400_v29 = vpop.eup %1399 }
 0x80b   :  { %657 = vrot.lane.b32.xlu2 %v1400_v29, %s1552_s3 }
 0x80c   :  { %v1402_v32 = vpop.eup %1401 }
 0x80d   :  { %v638_v34 = vadd.f32 1.0, %v1402_v32 }
 0x80f   :  { %1403 = vrcp.f32 %v638_v34  ;;  %v650_v50 = vand.u32 2147483648, %v638_v34  ;;  %vm644_vm9 = vweird.f32 %v638_v34  ;;  %v648_v51 = vand.u32 2147483647, %v638_v34 }
 0x810   :  { %1405 = vpow2.f32 %v1325_v11 }
 0x811   :  { %v651_v54 = vor.u32 1.1754944e-38, %v650_v50  ;;  %vm649_vm11 = vcmp.eq.f32.partialorder %v648_v51, 8.507059e+37 }
 0x815   :  { %v1404_v38 = vpop.eup %1403 }
 0x816   :  { %v1406_v43 = vpop.eup %1405  ;;  %v640_v44 = vmul.f32 %v1404_v38, %v638_v34  ;;  %vm645_vm8 = vweird.f32 %v1404_v38 }
 0x817   :  { %v701_v45 = vadd.f32 1.0, %v1406_v43  ;;  %vm646_vm10 = vmor %vm644_vm9, %vm645_vm8 }
 0x818   :  { %v641_v46 = vsub.f32 1.0, %v640_v44 }
 0x819   :  { %1407 = vrcp.f32 %v701_v45  ;;  %v713_v63 = vand.u32 2147483648, %v701_v45  ;;  %vm707_vm13 = vweird.f32 %v701_v45  ;;  %v711_v1 = vand.u32 2147483647, %v701_v45 }
 0x81a   :  { %v642_v47 = vmul.f32 %v1404_v38, %v641_v46 }
 0x81b   :  { %v714_v8 = vor.u32 1.1754944e-38, %v713_v63  ;;  %vm712_vm15 = vcmp.eq.f32.partialorder %v711_v1, 8.507059e+37 }
 0x81c   :  { %v643_v49 = vadd.f32 %v1404_v38, %v642_v47 }
 0x81e   :  { %v647_v53 = vsel %vm646_vm10, %v1404_v38, %v643_v49 }
 0x81f   :  { %v1408_v48 = vpop.eup %1407  ;;  %v652_v56 = vsel %vm649_vm11, %v651_v54, %v647_v53 }
 0x820   :  { %v703_v52 = vmul.f32 %v1408_v48, %v701_v45  ;;  %vm708_vm12 = vweird.f32 %v1408_v48  ;;  %v655_v19 = vmul.f32 %v652_v56, %v1838_v7 }
 0x821   :  { %vm709_vm14 = vmor %vm707_vm13, %vm708_vm12 }
 0x822   :  { %v704_v58 = vsub.f32 1.0, %v703_v52 }
 0x824   :  { %v705_v60 = vmul.f32 %v1408_v48, %v704_v58 }
 0x826   :  { %v706_v62 = vadd.f32 %v1408_v48, %v705_v60 }
 0x828   :  { %v710_v5 = vsel %vm709_vm14, %v1408_v48, %v706_v62 }
 0x829   :  { %v715_v12 = vsel %vm712_vm15, %v714_v8, %v710_v5 }
 0x82a   :  { %v718_v16 = vmul.f32 %v715_v12, %v1843_v14 }
 0x865   :  { %v658_v55 = vpop.permute.xlu2 %657 }
 0x866   :  { %v660_v59 = vmul.f32 %v658_v55, %v652_v56 }
 0x868   :  { %662 = vrot.lane.b32.xlu1 %v660_v59, %s1552_s3 }
 0x874   :  { %v721_v6 = vpop.permute.xlu0 %720 }
 0x875   :  { %v723_v15 = vmul.f32 %v721_v6, %v715_v12 }
 0x877   :  { %725 = vrot.lane.b32.xlu2 %v723_v15, %s1552_s3 }
 0x8d1   :  { %v726_v57 = vpop.permute.xlu2 %725 }
 0x8d2   :  { %v1872_v18 = vadd.f32 %v726_v57, %v718_v16 }
 0x8d4   :  { %1409 = vtanh.f32 %v1872_v18 }
 0x8da   :  { %v1410_v20 = vpop.eup %1409  ;;  %v663_v22 = vpop.permute.xlu1 %662 }
 0x8db   :  { %v1876_v61 = vadd.f32 %v663_v22, %v655_v19  ;;  %731 = vrot.lane.b32.xlu1 %v1410_v20, %s1552_s3 }
 0x8dd   :  { %1411 = vtanh.f32 %v1876_v61 }
 0x8e3   :  { %v1412_v23 = vpop.eup %1411 }
 0x8e4   :  { %668 = vrot.lane.b32.xlu0 %v1412_v23, %s1552_s3 }
 0x94d   :  { %v732_v24 = vpop.permute.xlu1 %731 }
 0x94e   :  { %v734_v14 = vmul.f32 %v732_v24, %v715_v12 }
 0x950   :  { %736 = vrot.lane.b32.xlu0 %v734_v14, %s1553_s29 }
 0x956   :  { %v669_v25 = vpop.permute.xlu0 %668 }
 0x957   :  { %v671_v26 = vmul.f32 %v669_v25, %v652_v56 }
 0x959   :  { %673 = vrot.lane.b32.xlu2 %v671_v26, %s1553_s29 }
 0x9b3   :  { %v674_v7 = vpop.permute.xlu2 %673 }
 0x9b4   :  { %1324 = vmatmul.msk.f32.vlgmr.msra.gmra.mxu2 %vm174_vm2, %v674_v7 }
 0x9b5   :  { %898 = vmatpush.msra.mxu2 %v1698_v39 }
 0x9b7   :  { %899 = vmatpush.msra.mxu2 %v1703_v40 }
 0x9b9   :  { %900 = vmatpush.msra.mxu2 %v1710_v41 }
 0x9bb   :  { %901 = vmatpush.msra.mxu2 %v1718_v42 }
 0x9c2   :  { %v737_v10 = vpop.permute.xlu0 %736 }
 0x9c3   :  { %1326 = vmatmul.msk.f32.vlgmr.msrb.gmra.mxu3 %vm174_vm2, %v737_v10  ;;  %1327 = vmatmul.msk.f32.vlgmr.msrb.gmra.mxu2 %vm174_vm2, %v737_v10 }
 0x9c4   :  { %918 = vmatpush.msrb.mxu3 %v1665_v33  ;;  %981 = vmatpush.msrb.mxu2 %v1790_v2 }
 0x9c6   :  { %919 = vmatpush.msrb.mxu3 %v1673_v35  ;;  %982 = vmatpush.msrb.mxu2 %v1792_v3 }
 0x9c8   :  { %920 = vmatpush.msrb.mxu3 %v1680_v36  ;;  %983 = vmatpush.msrb.mxu2 %v1796_v31 }
 0x9ca   :  { %921 = vmatpush.msrb.mxu3 %v1686_v37  ;;  %984 = vmatpush.msrb.mxu2 %v1801_v4 }
 0xa37   :  { %v694_v27 = vpop.f32.mrf.mxu2 }
 0xa38   :  { %v695_v29 = vadd.f32 %v1762_v0, %v694_v27 }
 0xa46   :  { %v757_v30 = vpop.f32.mrf.mxu3  ;;  %v777_v2 = vpop.f32.mrf.mxu2 }
 0xa47   :  { %v843_v32 = vadd.f32 %v757_v30, %v229_v28  ;;  %v780_v34 = vadd.f32 %v777_v2, %v695_v29 }
 0xa49   :  { %1413 = vtanh.f32 %v843_v32  ;;  %v1330_v31 = vmul.f32 -1.442695, %v843_v32  ;;  %v1328_v43 = vmul.f32 -1.442695, %v780_v34 }
 0xa4a   :  { %1415 = vtanh.f32 %v780_v34 }
 0xa4b   :  { %1417 = vpow2.f32 %v1330_v31 }
 0xa4f   :  { %v1414_v3 = vpop.eup %1413 }
 0xa50   :  { %v1416_v11 = vpop.eup %1415  ;;  %866 = vrot.lane.b32.xlu2 %v1414_v3, %s1552_s3 }
 0xa51   :  { %803 = vrot.lane.b32.xlu1 %v1416_v11, %s1552_s3  ;;  %v1418_v4 = vpop.eup %1417 }
 0xa52   :  { %v847_v38 = vadd.f32 1.0, %v1418_v4 }
 0xa54   :  { %1419 = vrcp.f32 %v847_v38  ;;  %v859_v50 = vand.u32 2147483648, %v847_v38  ;;  %vm853_vm1 = vweird.f32 %v847_v38  ;;  %v857_v51 = vand.u32 2147483647, %v847_v38 }
 0xa55   :  { %1421 = vpow2.f32 %v1328_v43 }
 0xa56   :  { %v860_v53 = vor.u32 1.1754944e-38, %v859_v50  ;;  %vm858_vm4 = vcmp.eq.f32.partialorder %v857_v51, 8.507059e+37 }
 0xa5a   :  { %v1420_v13 = vpop.eup %1419 }
 0xa5b   :  { %v849_v44 = vmul.f32 %v1420_v13, %v847_v38  ;;  %v1422_v47 = vpop.eup %1421  ;;  %vm854_vm0 = vweird.f32 %v1420_v13 }
 0xa5c   :  { %v784_v48 = vadd.f32 1.0, %v1422_v47  ;;  %vm855_vm3 = vmor %vm853_vm1, %vm854_vm0 }
 0xa5d   :  { %v850_v45 = vsub.f32 1.0, %v849_v44 }
 0xa5e   :  { %1423 = vrcp.f32 %v784_v48  ;;  %v796_v1 = vand.u32 2147483648, %v784_v48  ;;  %vm790_vm6 = vweird.f32 %v784_v48  ;;  %v794_v5 = vand.u32 2147483647, %v784_v48 }
 0xa5f   :  { %v851_v46 = vmul.f32 %v1420_v13, %v850_v45 }
 0xa60   :  { %v797_v6 = vor.u32 1.1754944e-38, %v796_v1  ;;  %vm795_vm8 = vcmp.eq.f32.partialorder %v794_v5, 8.507059e+37 }
 0xa61   :  { %v852_v49 = vadd.f32 %v1420_v13, %v851_v46 }
 0xa63   :  { %v856_v52 = vsel %vm855_vm3, %v1420_v13, %v852_v49 }
 0xa64   :  { %v861_v55 = vsel %vm858_vm4, %v860_v53, %v856_v52  ;;  %v1424_v58 = vpop.eup %1423 }
 0xa65   :  { %v786_v59 = vmul.f32 %v1424_v58, %v784_v48  ;;  %vm791_vm5 = vweird.f32 %v1424_v58  ;;  %v864_v57 = vmul.f32 %v861_v55, %v1872_v18 }
 0xa66   :  { %vm792_vm7 = vmor %vm790_vm6, %vm791_vm5 }
 0xa67   :  { %v787_v60 = vsub.f32 1.0, %v786_v59 }
 0xa69   :  { %v788_v62 = vmul.f32 %v1424_v58, %v787_v60 }
 0xa6b   :  { %v789_v63 = vadd.f32 %v1424_v58, %v788_v62 }
 0xa6d   :  { %v793_v8 = vsel %vm792_vm7, %v1424_v58, %v789_v63 }
 0xa6e   :  { %v798_v15 = vsel %vm795_vm8, %v797_v6, %v793_v8 }
 0xa6f   :  { %v801_v23 = vmul.f32 %v798_v15, %v1876_v61 }
 0xaaa   :  { %v867_v54 = vpop.permute.xlu2 %866 }
 0xaab   :  { %v869_v56 = vmul.f32 %v867_v54, %v861_v55 }
 0xaad   :  { %871 = vrot.lane.b32.xlu1 %v869_v56, %s1552_s3 }
 0xac3   :  { %v804_v12 = vpop.permute.xlu1 %803 }
 0xac4   :  { %v806_v16 = vmul.f32 %v804_v12, %v798_v15 }
 0xac6   :  { %808 = vrot.lane.b32.xlu0 %v806_v16, %s1552_s3 }
 0xb1f   :  { %v872_v19 = vpop.permute.xlu1 %871 }
 0xb20   :  { %v1906_v20 = vadd.f32 %v872_v19, %v864_v57 }
 0xb22   :  { %1425 = vtanh.f32 %v1906_v20 }
 0xb28   :  { %v1426_v22 = vpop.eup %1425 }
 0xb29   :  { %877 = vrot.lane.b32.xlu0 %v1426_v22, %s1552_s3 }
 0xb38   :  { %v809_v24 = vpop.permute.xlu0 %808 }
 0xb39   :  { %v1911_v14 = vadd.f32 %v809_v24, %v801_v23  ;;  %v1469_v24 = vld [vmem:[%s2011_s4] ss:$0 sm:$0xff] }
 0xb3b   :  { %1427 = vtanh.f32 %v1911_v14 }
 0xb41   :  { %v1428_v25 = vpop.eup %1427 }
 0xb42   :  { %814 = vrot.lane.b32.xlu2 %v1428_v25, %s1552_s3 }
 0xb9b   :  { %v878_v26 = vpop.permute.xlu0 %877 }
 0xb9c   :  { %v815_v18 = vpop.permute.xlu2 %814  ;;  %v880_v7 = vmul.f32 %v878_v26, %v861_v55 }
 0xb9d   :  { %v817_v10 = vmul.f32 %v815_v18, %v798_v15 }
 0xb9e   :  { %882 = vrot.lane.b32.xlu2 %v880_v7, %s1553_s29 }
 0xb9f   :  { %819 = vrot.lane.b32.xlu1 %v817_v10, %s1553_s29 }
 0xbf8   :  { %v883_v27 = vpop.permute.xlu2 %882 }
 0xbf9   :  { %1331 = vmatmul.msk.f32.vlgmr.msra.gmra.mxu2 %vm174_vm2, %v883_v27 }
 0xbfa   :  { %1190 = vmatpush.msra.mxu2 %v1665_v33  ;;  %v232_v33 = vadd.f32 %v1649_v9, %v1774_v17 }
 0xbfc   :  { %1191 = vmatpush.msra.mxu2 %v1673_v35 }
 0xbfe   :  { %1192 = vmatpush.msra.mxu2 %v1680_v36 }
 0xc00   :  { %1193 = vmatpush.msra.mxu2 %v1686_v37 }
 0xc11   :  { %v820_v61 = vpop.permute.xlu1 %819 }
 0xc12   :  { %1329 = vmatmul.msk.f32.vlgmr.msra.gmra.mxu3 %vm174_vm2, %v820_v61 }
 0xc13   :  { %1044 = vmatpush.msra.mxu3 %v1698_v39 }
 0xc15   :  { %1045 = vmatpush.msra.mxu3 %v1703_v40 }
 0xc17   :  { %1046 = vmatpush.msra.mxu3 %v1710_v41 }
 0xc19   :  { %1047 = vmatpush.msra.mxu3 %v1718_v42 }
 0xc1a   :  { %1332 = vmatmul.msk.f32.vlgmr.msrb.gmra.mxu3 %vm174_vm2, %v883_v27 }
 0xc7c   :  { %v903_v35 = vpop.f32.mrf.mxu2 }
 0xc7d   :  { %v989_v36 = vadd.f32 %v903_v35, %v232_v33 }
 0xc7f   :  { %1429 = vtanh.f32 %v989_v36  ;;  %v1335_v42 = vmul.f32 -1.442695, %v989_v36 }
 0xc85   :  { %v1430_v37 = vpop.eup %1429 }
 0xc86   :  { %1012 = vrot.lane.b32.xlu0 %v1430_v37, %s1552_s3 }
 0xc95   :  { %v840_v28 = vpop.f32.mrf.mxu3 }
 0xc96   :  { %v841_v39 = vadd.f32 %v1762_v0, %v840_v28 }
 0xc9d   :  { %v923_v29 = vpop.f32.mrf.mxu3 }
 0xc9e   :  { %v926_v40 = vadd.f32 %v923_v29, %v841_v39 }
 0xca0   :  { %1431 = vtanh.f32 %v926_v40  ;;  %v1333_v34 = vmul.f32 -1.442695, %v926_v40 }
 0xca1   :  { %1433 = vpow2.f32 %v1335_v42 }
 0xca6   :  { %v1432_v41 = vpop.eup %1431 }
 0xca7   :  { %949 = vrot.lane.b32.xlu1 %v1432_v41, %s1552_s3  ;;  %v1434_v30 = vpop.eup %1433 }
 0xca8   :  { %v993_v2 = vadd.f32 1.0, %v1434_v30 }
 0xcaa   :  { %1435 = vrcp.f32 %v993_v2  ;;  %v1005_v31 = vand.u32 2147483648, %v993_v2  ;;  %vm999_vm10 = vweird.f32 %v993_v2  ;;  %v1003_v4 = vand.u32 2147483647, %v993_v2 }
 0xcab   :  { %1437 = vpow2.f32 %v1333_v34 }
 0xcac   :  { %v1006_v43 = vor.u32 1.1754944e-38, %v1005_v31  ;;  %vm1004_vm12 = vcmp.eq.f32.partialorder %v1003_v4, 8.507059e+37 }
 0xcb0   :  { %v1436_v9 = vpop.eup %1435 }
 0xcb1   :  { %v995_v17 = vmul.f32 %v1436_v9, %v993_v2  ;;  %vm1000_vm9 = vweird.f32 %v1436_v9  ;;  %v1438_v13 = vpop.eup %1437 }
 0xcb2   :  { %vm1001_vm11 = vmor %vm999_vm10, %vm1000_vm9  ;;  %v930_v46 = vadd.f32 1.0, %v1438_v13 }
 0xcb3   :  { %v996_v32 = vsub.f32 1.0, %v995_v17 }
 0xcb4   :  { %1439 = vrcp.f32 %v930_v46  ;;  %v942_v53 = vand.u32 2147483648, %v930_v46  ;;  %vm936_vm14 = vweird.f32 %v930_v46  ;;  %v940_v54 = vand.u32 2147483647, %v930_v46 }
 0xcb5   :  { %v997_v3 = vmul.f32 %v1436_v9, %v996_v32 }
 0xcb6   :  { %v943_v56 = vor.u32 1.1754944e-38, %v942_v53  ;;  %vm941_vm0 = vcmp.eq.f32.partialorder %v940_v54, 8.507059e+37 }
 0xcb7   :  { %v998_v11 = vadd.f32 %v1436_v9, %v997_v3 }
 0xcb9   :  { %v1002_v38 = vsel %vm1001_vm11, %v1436_v9, %v998_v11 }
 0xcba   :  { %v1007_v45 = vsel %vm1004_vm12, %v1006_v43, %v1002_v38  ;;  %v1440_v48 = vpop.eup %1439 }
 0xcbb   :  { %v932_v49 = vmul.f32 %v1440_v48, %v930_v46  ;;  %vm937_vm13 = vweird.f32 %v1440_v48  ;;  %v1010_v62 = vmul.f32 %v1007_v45, %v1906_v20 }
 0xcbc   :  { %vm938_vm15 = vmor %vm936_vm14, %vm937_vm13  ;;  %vm1283_vm14 = vcmask 15360  }
 0xcbd   :  { %v933_v50 = vsub.f32 1.0, %v932_v49 }
 0xcbf   :  { %v934_v51 = vmul.f32 %v1440_v48, %v933_v50 }
 0xcc1   :  { %v935_v52 = vadd.f32 %v1440_v48, %v934_v51 }
 0xcc3   :  { %v939_v55 = vsel %vm938_vm15, %v1440_v48, %v935_v52 }
 0xcc4   :  { %v944_v59 = vsel %vm941_vm0, %v943_v56, %v939_v55 }
 0xcc5   :  { %v947_v8 = vmul.f32 %v944_v59, %v1911_v14  ;;  %v235_v14 = vadd.f32 %v1469_v24, %v1776_v21 }
 0xcf8   :  { %v1013_v44 = vpop.permute.xlu0 %1012 }
 0xcf9   :  { %v1015_v47 = vmul.f32 %v1013_v44, %v1007_v45 }
 0xcfb   :  { %1017 = vrot.lane.b32.xlu2 %v1015_v47, %s1552_s3 }
 0xd19   :  { %v950_v58 = vpop.permute.xlu1 %949 }
 0xd1a   :  { %v952_v60 = vmul.f32 %v950_v58, %v944_v59 }
 0xd1c   :  { %954 = vrot.lane.b32.xlu0 %v952_v60, %s1552_s3 }
 0xd55   :  { %v1018_v63 = vpop.permute.xlu2 %1017 }
 0xd56   :  { %v1936_v1 = vadd.f32 %v1018_v63, %v1010_v62 }
 0xd58   :  { %1441 = vtanh.f32 %v1936_v1 }
 0xd5e   :  { %v1442_v5 = vpop.eup %1441 }
 0xd5f   :  { %1023 = vrot.lane.b32.xlu1 %v1442_v5, %s1552_s3 }
 0xd8e   :  { %v955_v6 = vpop.permute.xlu0 %954 }
 0xd8f   :  { %v1941_v12 = vadd.f32 %v955_v6, %v947_v8  ;;  %v1470_v6 = vld [vmem:[%s2014_s7] ss:$0 sm:$0xff] }
 0xd91   :  { %1443 = vtanh.f32 %v1941_v12 }
 0xd97   :  { %v1444_v15 = vpop.eup %1443 }
 0xd98   :  { %960 = vrot.lane.b32.xlu2 %v1444_v15, %s1552_s3 }
 0xdd1   :  { %v1024_v16 = vpop.permute.xlu1 %1023 }
 0xdd2   :  { %v1026_v57 = vmul.f32 %v1024_v16, %v1007_v45 }
 0xdd4   :  { %1028 = vrot.lane.b32.xlu0 %v1026_v57, %s1553_s29 }
 0xdf2   :  { %v961_v19 = vpop.permute.xlu2 %960 }
 0xdf3   :  { %v1946_v20 = vmul.f32 %v961_v19, %v944_v59 }
 0xdf5   :  { %965 = vrot.lane.b32.xlu1 %v1946_v20, %s1553_s29  ;;  %v1236_v19 = vmax.f32 %v1946_v20, 0.0  ;;  %v255_v20 = vld [vmem:[%s2016_s9] sm:$0xff] }
 0xe46   :  { %v1029_v22 = vpop.permute.xlu0 %1028 }
 0xe47   :  { %1336 = vmatmul.msk.f32.vlgmr.msra.gmra.mxu3 %vm174_vm2, %v1029_v22  ;;  %1337 = vmatmul.msk.f32.vlgmr.msra.gmra.mxu0 %vm174_vm2, %v1029_v22 }
 0xe67   :  { %v966_v23 = vpop.permute.xlu1 %965 }
 0xe68   :  { %1334 = vmatmul.msk.f32.vlgmr.msrb.gmra.mxu2 %vm174_vm2, %v966_v23 }
 0xec4   :  { %v1069_v27 = vpop.f32.mrf.mxu0 }
 0xeca   :  { %v1049_v25 = vpop.f32.mrf.mxu3 }
 0xecb   :  { %v1135_v26 = vadd.f32 %v1049_v25, %v235_v14  ;;  %v258_v14 = vld [vmem:[%s2016_s9 + $0x18] sm:$0xff]  ;;  %v257_v25 = vld [vmem:[%s2016_s9 + $0x10] sm:$0xff] }
 0xecc   :  { %1269 = vmatpush.msrb.mxu3 %v258_v14 }
 0xecd   :  { %1445 = vtanh.f32 %v1135_v26  ;;  %v1340_v35 = vmul.f32 -1.442695, %v1135_v26  ;;  %v256_v26 = vld [vmem:[%s2016_s9 + $0x8] sm:$0xff] }
 0xece   :  { %1270 = vmatpush.msrb.mxu3 %v257_v25 }
 0xed0   :  { %1271 = vmatpush.msrb.mxu3 %v256_v26 }
 0xed2   :  { %1272 = vmatpush.msrb.mxu3 %v255_v20 }
 0xed3   :  { %v1446_v18 = vpop.eup %1445 }
 0xed4   :  { %1158 = vrot.lane.b32.xlu2 %v1446_v18, %s1552_s3 }
 0xeeb   :  { %v986_v7 = vpop.f32.mrf.mxu2 }
 0xeec   :  { %v987_v10 = vadd.f32 %v1762_v0, %v986_v7 }
 0xeee   :  { %v1072_v61 = vadd.f32 %v1069_v27, %v987_v10 }
 0xef0   :  { %1447 = vtanh.f32 %v1072_v61  ;;  %v1338_v32 = vmul.f32 -1.442695, %v1072_v61 }
 0xef1   :  { %1449 = vpow2.f32 %v1340_v35 }
 0xef6   :  { %v1448_v33 = vpop.eup %1447 }
 0xef7   :  { %1095 = vrot.lane.b32.xlu0 %v1448_v33, %s1552_s3  ;;  %v1450_v36 = vpop.eup %1449 }
 0xef8   :  { %v1139_v37 = vadd.f32 1.0, %v1450_v36 }
 0xefa   :  { %1451 = vrcp.f32 %v1139_v37  ;;  %v1151_v41 = vand.u32 2147483648, %v1139_v37  ;;  %vm1145_vm3 = vweird.f32 %v1139_v37  ;;  %v1149_v0 = vand.u32 2147483647, %v1139_v37 }
 0xefb   :  { %1453 = vpow2.f32 %v1338_v32 }
 0xefc   :  { %v1152_v30 = vor.u32 1.1754944e-38, %v1151_v41  ;;  %vm1150_vm5 = vcmp.eq.f32.partialorder %v1149_v0, 8.507059e+37 }
 0xf00   :  { %v1452_v21 = vpop.eup %1451 }
 0xf01   :  { %v1141_v28 = vmul.f32 %v1452_v21, %v1139_v37  ;;  %vm1146_vm1 = vweird.f32 %v1452_v21  ;;  %v1454_v34 = vpop.eup %1453 }
 0xf02   :  { %vm1147_vm4 = vmor %vm1145_vm3, %vm1146_vm1  ;;  %v1076_v3 = vadd.f32 1.0, %v1454_v34 }
 0xf03   :  { %v1142_v39 = vsub.f32 1.0, %v1141_v28 }
 0xf04   :  { %1455 = vrcp.f32 %v1076_v3  ;;  %v1088_v43 = vand.u32 2147483648, %v1076_v3  ;;  %vm1082_vm7 = vweird.f32 %v1076_v3  ;;  %v1086_v44 = vand.u32 2147483647, %v1076_v3 }
 0xf05   :  { %v1143_v29 = vmul.f32 %v1452_v21, %v1142_v39 }
 0xf06   :  { %v1089_v46 = vor.u32 1.1754944e-38, %v1088_v43  ;;  %vm1087_vm9 = vcmp.eq.f32.partialorder %v1086_v44, 8.507059e+37 }
 0xf07   :  { %v1144_v40 = vadd.f32 %v1452_v21, %v1143_v29 }
 0xf09   :  { %v1148_v42 = vsel %vm1147_vm4, %v1452_v21, %v1144_v40 }
 0xf0a   :  { %v1153_v9 = vsel %vm1150_vm5, %v1152_v30, %v1148_v42  ;;  %v1456_v11 = vpop.eup %1455 }
 0xf0b   :  { %v1078_v31 = vmul.f32 %v1456_v11, %v1076_v3  ;;  %vm1083_vm6 = vweird.f32 %v1456_v11  ;;  %v1156_v50 = vmul.f32 %v1153_v9, %v1936_v1 }
 0xf0c   :  { %vm1084_vm8 = vmor %vm1082_vm7, %vm1083_vm6 }
 0xf0d   :  { %v1079_v4 = vsub.f32 1.0, %v1078_v31 }
 0xf0f   :  { %v1080_v38 = vmul.f32 %v1456_v11, %v1079_v4 }
 0xf11   :  { %v1081_v13 = vadd.f32 %v1456_v11, %v1080_v38 }
 0xf13   :  { %v1085_v45 = vsel %vm1084_vm8, %v1456_v11, %v1081_v13 }
 0xf14   :  { %v1090_v48 = vsel %vm1087_vm9, %v1089_v46, %v1085_v45 }
 0xf15   :  { %v1093_v54 = vmul.f32 %v1090_v48, %v1941_v12 }
 0xf2e   :  { %v1159_v2 = vpop.permute.xlu2 %1158 }
 0xf2f   :  { %v1161_v17 = vmul.f32 %v1159_v2, %v1153_v9 }
 0xf31   :  { %1163 = vrot.lane.b32.xlu1 %v1161_v17, %s1552_s3 }
 0xf69   :  { %v1096_v47 = vpop.permute.xlu0 %1095 }
 0xf6a   :  { %v1098_v49 = vmul.f32 %v1096_v47, %v1090_v48 }
 0xf6c   :  { %1100 = vrot.lane.b32.xlu2 %v1098_v49, %s1552_s3 }
 0xfa3   :  { %v1164_v51 = vpop.permute.xlu1 %1163 }
 0xfa4   :  { %v1166_v52 = vadd.f32 %v1164_v51, %v1156_v50 }
 0xfa6   :  { %1457 = vtanh.f32 %v1166_v52 }
 0xfac   :  { %v1458_v53 = vpop.eup %1457 }
 0xfad   :  { %1169 = vrot.lane.b32.xlu0 %v1458_v53, %s1552_s3 }
 0xfc6   :  { %v1101_v55 = vpop.permute.xlu2 %1100 }
 0xfc7   :  { %v1103_v56 = vadd.f32 %v1101_v55, %v1093_v54 }
 0xfc9   :  { %1459 = vtanh.f32 %v1103_v56 }
 0xfcf   :  { %v1460_v58 = vpop.eup %1459 }
 0xfd0   :  { %1106 = vrot.lane.b32.xlu1 %v1460_v58, %s1552_s3 }
0x101f   :  { %v1170_v59 = vpop.permute.xlu0 %1169 }
0x1020   :  { %v1172_v60 = vmul.f32 %v1170_v59, %v1153_v9  ;;  %v1356_v9 = vld [vmem:[%s2017_s10] ss:$0 sm:$0xff] }
0x1022   :  { %1174 = vrot.lane.b32.xlu2 %v1172_v60, %s1553_s29 }
0x1042   :  { %v1107_v62 = vpop.permute.xlu1 %1106 }
0x1043   :  { %v1109_v63 = vmul.f32 %v1107_v62, %v1090_v48 }
0x1045   :  { %1111 = vrot.lane.b32.xlu0 %v1109_v63, %s1553_s29  ;;  %v1237_v40 = vmax.f32 %v1109_v63, 0.0 }
0x107c   :  { %v1175_v1 = vpop.permute.xlu2 %1174 }
0x107d   :  { %1341 = vmatmul.msk.f32.vlgmr.msra.gmra.mxu2 %vm174_vm2, %v1175_v1 }
0x10b7   :  { %v1112_v5 = vpop.permute.xlu0 %1111 }
0x10b8   :  { %1339 = vmatmul.msk.f32.vlgmr.msrb.gmra.mxu1 %vm174_vm2, %v1112_v5 }
0x1100   :  { %v1195_v15 = vpop.f32.mrf.mxu2 }
0x1135   :  { %v1132_v8 = vpop.f32.mrf.mxu1 }
0x1136   :  { %v1133_v12 = vadd.f32 %v1470_v6, %v1132_v8 }
0x1138   :  { %v1198_v16 = vadd.f32 %v1195_v15, %v1133_v12 }
0x113a   :  { %1461 = vtanh.f32 %v1198_v16  ;;  %v1342_v22 = vmul.f32 -1.442695, %v1198_v16 }
0x113c   :  { %1463 = vpow2.f32 %v1342_v22 }
0x1140   :  { %v1462_v57 = vpop.eup %1461 }
0x1141   :  { %1221 = vrot.lane.b32.xlu1 %v1462_v57, %s1552_s3 }
0x1142   :  { %v1464_v23 = vpop.eup %1463 }
0x1143   :  { %v1202_v24 = vadd.f32 1.0, %v1464_v23 }
0x1145   :  { %1465 = vrcp.f32 %v1202_v24  ;;  %v1214_v33 = vand.u32 2147483648, %v1202_v24  ;;  %vm1208_vm11 = vweird.f32 %v1202_v24  ;;  %v1212_v35 = vand.u32 2147483647, %v1202_v24 }
0x1147   :  { %v1215_v37 = vor.u32 1.1754944e-38, %v1214_v33  ;;  %vm1213_vm13 = vcmp.eq.f32.partialorder %v1212_v35, 8.507059e+37 }
0x1149   :  { %1245 = vrot.lane.b32.xlu1 %v1236_v19, %s1553_s29 }
0x114b   :  { %v1466_v18 = vpop.eup %1465 }
0x114c   :  { %v1204_v7 = vmul.f32 %v1466_v18, %v1202_v24  ;;  %vm1209_vm10 = vweird.f32 %v1466_v18 }
0x114d   :  { %vm1210_vm12 = vmor %vm1208_vm11, %vm1209_vm10 }
0x114e   :  { %v1205_v10 = vsub.f32 1.0, %v1204_v7 }
0x1150   :  { %v1206_v27 = vmul.f32 %v1466_v18, %v1205_v10 }
0x1152   :  { %v1207_v61 = vadd.f32 %v1466_v18, %v1206_v27 }
0x1154   :  { %v1211_v36 = vsel %vm1210_vm12, %v1466_v18, %v1207_v61 }
0x1155   :  { %v1216_v28 = vsel %vm1213_vm13, %v1215_v37, %v1211_v36 }
0x1156   :  { %v1219_v41 = vmul.f32 %v1216_v28, %v1103_v56 }
0x11b3   :  { %v1222_v21 = vpop.permute.xlu1 %1221 }
0x11b4   :  { %v1224_v39 = vmul.f32 %v1222_v21, %v1216_v28 }
0x11b6   :  { %1226 = vrot.lane.b32.xlu2 %v1224_v39, %s1552_s3 }
0x11bb   :  { %v1246_v29 = vpop.permute.xlu1 %1245 }
0x11bc   :  { %1343 = vmatmul.msk.f32.vlgmr.msrb.gmra.mxu3 %vm174_vm2, %v1246_v29 }
0x11be   :  { %1247 = vrot.lane.b32.xlu2 %v1237_v40, %s1553_s29 }
0x1210   :  { %v1227_v0 = vpop.permute.xlu2 %1226 }
0x1211   :  { %v1229_v42 = vadd.f32 %v1227_v0, %v1219_v41 }
0x1213   :  { %1467 = vtanh.f32 %v1229_v42 }
0x1218   :  { %v1248_v30 = vpop.permute.xlu2 %1247 }
0x1219   :  { %v1468_v2 = vpop.eup %1467  ;;  %1344 = vmatmul.msk.f32.gmra.mxu3 %vm174_vm2, %v1248_v30 }
0x121a   :  { %1232 = vrot.lane.b32.xlu0 %v1468_v2, %s1552_s3 }
0x123f   :  { %v1274_v17 = vpop.f32.mrf.mxu3 }
0x1240   :  { %v1275_v32 = vadd.f32 %v1356_v9, %v1274_v17 }
0x1242   :  { %1284 = vst.msk [vmem:[%s2018_s11] sm:$0xff] %vm1283_vm14, %v1275_v32 }
0x128c   :  { %v1233_v34 = vpop.permute.xlu0 %1232 }
0x128d   :  { %v1235_v3 = vmul.f32 %v1233_v34, %v1216_v28 }
0x128f   :  { %v1238_v11 = vmax.f32 %v1235_v3, 0.0 }
0x1291   :  { %1249 = vrot.lane.b32.xlu0 %v1238_v11, %s1553_s29 }
0x129c   :  { %v1277_v31 = vpop.f32.mrf.mxu3 }
0x129d   :  { %v1278_v4 = vadd.f32 %v1356_v9, %v1277_v31 }
0x129f   :  { %1285 = vst.msk [vmem:[%s2018_s11 + $0x8] sm:$0xff] %vm1283_vm14, %v1278_v4 }
0x1303   :  { %v1250_v38 = vpop.permute.xlu0 %1249 }
0x1304   :  { %1345 = vmatmul.msk.f32.gmra.mxu3 %vm174_vm2, %v1250_v38 }
0x1387   :  { %v1280_v13 = vpop.f32.mrf.mxu3 }
0x1388   :  { %v1281_v43 = vadd.f32 %v1356_v9, %v1280_v13 }
0x138a   :  { %1286 = vst.msk [vmem:[%s2018_s11 + $0x10] sm:$0xff] %vm1283_vm14, %v1281_v43 }
0x138b   :  { %1291 = vsyncpa [#allocation3], 1 }
0x138c   :  { %1292 = vsyncpa [#allocation5], 1 }

</bundles_post_ra>
